<compile_context>
chip_gen: v5e
topology: v5e:2x2
jax: 0.10.0
libtpu: 0.0.40
codegen_flags: <defaults>
</compile_context>

<pallas_src>
import functools

import jax
import jax.numpy as jnp
from jax import lax
from jax.experimental import pallas as pl
from jax.experimental.pallas import tpu as pltpu


# ----------------------------- fused Pallas kernel ---------------------------
def _up_s_fused_kernel(x0_ref, masks_ref, w1_ref, b1_ref, w2_ref, b2_ref,
                       wo_ref, bo_ref, wu_ref, bu_ref, y0_ref, up_ref, *, H, W):
    """Whole up_s forward for one batch element in a lane-dense (C, H*W) layout.

    x0_ref:    (1, Cin, P)        P = H*W flattened spatial on lanes
    masks_ref: (2, P)             row0: col>=1, row1: col<=W-2  (0/1 f32)
    w*_ref:    (Cout, 9*Cin)      folded conv weights, tap-major (dy,dx) order
    b*_ref:    (Cout, 1)          folded conv+BN bias
    wu_ref:    (Cu, 9*Cin)        transposed-conv weights, tap (ky,kx) order
    y0_ref:    (1, 1, P)          sigmoid output (lane-dense)
    up_ref:    (1, 4, Cu, P)      4 sub-pixel phases of the up-conv output
    """
    P = H * W
    WP = W + 1                                  # flat-domain halo on each side

    m_left = masks_ref[0:1, :]                  # (1, P)
    m_right = masks_ref[1:2, :]                 # (1, P)

    def padflat(x):
        # Zero halo of one full row (+1) on each side: row over/under-runs of a
        # flattened spatial shift land in the halo and read zeros.
        z = jnp.zeros((x.shape[0], WP), jnp.float32)
        return jnp.concatenate([z, x, z], axis=1)          # (C, P + 2W + 2)

    def shift(xp, s):
        # Flattened spatial shift by s = (dy-1)*W + (dx-1); static lane slice.
        return xp[:, WP + s: WP + s + P]

    dot = functools.partial(jnp.dot, preferred_element_type=jnp.float32)

    def conv3x3(x, w_ref, b_ref, act):
        """3x3 'same' conv: 9 shifted copies, one MXU contraction per tap."""
        C = x.shape[0]
        Cout = b_ref.shape[0]
        xp = padflat(x)
        acc = jnp.zeros((Cout, P), jnp.float32)
        for dy in range(3):
            for dx in range(3):
                z = shift(xp, (dy - 1) * W + (dx - 1))
                if dx == 0:                      # needs col-1 >= 0
                    z = z * m_left
                elif dx == 2:                    # needs col+1 <= W-1
                    z = z * m_right
                t = dy * 3 + dx
                wt = w_ref[:, t * C:(t + 1) * C]             # (Cout, C)
                acc = acc + dot(wt, z)                       # MXU
        acc = acc + b_ref[...]
        if act == "relu":
            return jnp.maximum(acc, 0.0)
        return jax.nn.sigmoid(acc)                           # EUP

    # conv2: Conv+BN+ReLU -> Conv+(DropBlock=id)+BN+ReLU
    x0 = x0_ref[0]                                           # (Cin, P)
    h = conv3x3(x0, w1_ref, b1_ref, "relu")                  # (Cout, P)
    y = conv3x3(h, w2_ref, b2_ref, "relu")                   # (Cout, P)

    # out: Conv(c_out->1)+(DropBlock=id)+Sigmoid.  Weights are zero-padded to
    # 8 output rows at pack time (non-degenerate MXU M); only row 0 is real.
    y0_full = conv3x3(y, wo_ref, bo_ref, "sigmoid")          # (8, P)
    y0_ref[0] = y0_full[0:1, :]                              # lane-dense store

    # up: ConvTranspose2d(k=3, s=2, p=1, op=1)+BN+ReLU via sub-pixel phases.
    #   out[co, 2q+r] needs only y[q] / y[q+1] shifted copies -> 4 phase GEMMs.
    C = y.shape[0]
    yp = padflat(y)
    z01 = shift(yp, 1) * m_right                 # y[qy,   qx+1]
    z10 = shift(yp, W)                           # y[qy+1, qx  ] (halo gives 0 row)
    z11 = shift(yp, W + 1) * m_right             # y[qy+1, qx+1]
    bu = bu_ref[...]                             # (Cu, 1)

    def wtap(ky, kx):
        t = ky * 3 + kx
        return wu_ref[:, t * C:(t + 1) * C]      # (Cu, C)

    def act_u(a):
        return jnp.maximum(a + bu, 0.0)

    up_ref[0, 0] = act_u(dot(wtap(1, 1), y))                                   # (ry=0,rx=0)
    up_ref[0, 1] = act_u(dot(wtap(1, 2), y) + dot(wtap(1, 0), z01))            # (0,1)
    up_ref[0, 2] = act_u(dot(wtap(2, 1), y) + dot(wtap(0, 1), z10))            # (1,0)
    up_ref[0, 3] = act_u(dot(wtap(2, 2), y) + dot(wtap(2, 0), z01)
                         + dot(wtap(0, 2), z10) + dot(wtap(0, 0), z11))        # (1,1)


# ------------------------------- wrapper --------------------------------------
def up_s_forward(x0_nchw, x1_nchw, kp):
    """x0: (N, c_in, H, W), x1: (N, c_out//2, 2H, 2W) -> (y0 NCHW, y NCHW)."""
    N, Cin, H, W = x0_nchw.shape
    P = H * W
    Cu = kp["bu"].shape[0]

    x0f = x0_nchw.reshape(N, Cin, P)                  # free reshape, lane-dense

    def rep2(shape):
        return pl.BlockSpec(shape, lambda n: (0, 0))

    y0f, upf = pl.pallas_call(
        functools.partial(_up_s_fused_kernel, H=H, W=W),
        out_shape=(jax.ShapeDtypeStruct((N, 1, P), jnp.float32),
                   jax.ShapeDtypeStruct((N, 4, Cu, P), jnp.float32)),
        grid=(N,),
        in_specs=[
            pl.BlockSpec((1, Cin, P), lambda n: (n, 0, 0)),
            rep2(kp["masks"].shape),
            rep2(kp["w1"].shape), rep2(kp["b1"].shape),
            rep2(kp["w2"].shape), rep2(kp["b2"].shape),
            rep2(kp["wo"].shape), rep2(kp["bo"].shape),
            rep2(kp["wu"].shape), rep2(kp["bu"].shape),
        ],
        out_specs=(pl.BlockSpec((1, 1, P), lambda n: (n, 0, 0)),
                   pl.BlockSpec((1, 4, Cu, P), lambda n: (n, 0, 0, 0))),
        compiler_params=pltpu.CompilerParams(
            dimension_semantics=("parallel",)),
    )(x0f, kp["masks"], kp["w1"], kp["b1"], kp["w2"], kp["b2"],
      kp["wo"], kp["bo"], kp["wu"], kp["bu"])

    y0 = y0f.reshape(N, 1, H, W)
    # Interleave the 4 sub-pixel phases back to (N, Cu, 2H, 2W) and append x1
    # (tiny XLA reshape/transpose/concat on final outputs only).
    up = upf.reshape(N, 2, 2, Cu, H, W).transpose(0, 3, 4, 1, 5, 2)
    up = up.reshape(N, Cu, 2 * H, 2 * W)
    y = jnp.concatenate([up, x1_nchw], axis=1)        # torch.cat((up, x1), dim=1)
    return y0, y


# --------------------------- pure-JAX reference -------------------------------
def ref_forward(x0_nchw, x1_nchw, raw):
    x0 = jnp.transpose(x0_nchw, (0, 2, 3, 1))
    x1 = jnp.transpose(x1_nchw, (0, 2, 3, 1))
    pad1 = lambda t: jnp.pad(t, ((0, 0), (1, 1), (1, 1), (0, 0)))

    def conv(xp, w, scale, bias, act):
        o = lax.conv_general_dilated(xp, w, (1, 1), "VALID",
                                     dimension_numbers=("NHWC", "HWIO", "NHWC"))
        o = o * scale.reshape(1, 1, 1, -1) + bias.reshape(1, 1, 1, -1)
        if act == "relu":
            return jnp.maximum(o, 0.0)
        return jax.nn.sigmoid(o)

    h = conv(pad1(x0), raw["w1"], raw["s1"], raw["b1"], "relu")
    y = conv(pad1(h), raw["w2"], raw["s2"], raw["b2"], "relu")
    y0 = conv(pad1(y), raw["wo"], jnp.ones((1,), jnp.float32), raw["bo"], "sigmoid")

    # ConvTranspose2d(k=3,s=2,p=1,op=1) == zero-stuff + pad(1,2) + valid conv
    N, H, W, C = y.shape
    z = jnp.zeros((N, 2 * H - 1, 2 * W - 1, C), y.dtype).at[:, ::2, ::2, :].set(y)
    z = jnp.pad(z, ((0, 0), (1, 2), (1, 2), (0, 0)))
    wu = jnp.transpose(jnp.flip(raw["wt"], axis=(2, 3)), (2, 3, 0, 1))   # HWIO
    up = conv(z, wu, raw["su"], raw["bu"], "relu")

    ycat = jnp.concatenate([up, x1], axis=-1)
    return jnp.transpose(y0, (0, 3, 1, 2)), jnp.transpose(ycat, (0, 3, 1, 2))


# ------------------------------ parameters ------------------------------------
def init_params(key, c_in, c_out):
    """Raw (PyTorch-like) parameters with BN already folded to (scale, bias)."""
    ks = jax.random.split(key, 11)
    eps = 1e-5
    f32 = jnp.float32

    def cw(k, ci, co):
        return 0.1 * jax.random.normal(k, (3, 3, ci, co), f32)      # HWIO

    def cb(k, co):
        return 0.05 * jax.random.normal(k, (co,), f32)

    def bn(k, c):
        kg, kb, km, kv = jax.random.split(k, 4)
        gamma = jax.random.uniform(kg, (c,), f32, 0.5, 1.5)
        beta = 0.1 * jax.random.normal(kb, (c,), f32)
        mean = 0.1 * jax.random.normal(km, (c,), f32)
        var = jax.random.uniform(kv, (c,), f32, 0.5, 1.5)
        return gamma, beta, mean, var

    def fold(conv_b, gamma, beta, mean, var):
        scale = gamma / jnp.sqrt(var + eps)
        bias = beta + (conv_b - mean) * scale
        return scale, bias

    c_half = c_out // 2
    w1 = cw(ks[0], c_in, c_out)
    s1, b1 = fold(cb(ks[1], c_out), *bn(ks[2], c_out))
    w2 = cw(ks[3], c_out, c_out)
    s2, b2 = fold(cb(ks[4], c_out), *bn(ks[5], c_out))
    wo = cw(ks[6], c_out, 1)
    bo = cb(ks[7], 1)
    # ConvTranspose2d weight in PyTorch layout (in=c_out, out=c_half, kH, kW)
    wt = 0.1 * jax.random.normal(ks[8], (c_out, c_half, 3, 3), f32)
    su, bu = fold(cb(ks[9], c_half), *bn(ks[10], c_half))
    return dict(w1=w1, s1=s1, b1=b1, w2=w2, s2=s2, b2=b2,
                wo=wo, bo=bo, wt=wt, su=su, bu=bu)


def pack_params(raw, H, W):
    """Pack raw params into the fused-kernel layout (BN scale folded into W)."""
    f32 = jnp.float32

    def pack_conv(w_hwio, scale, bias):
        co = w_hwio.shape[-1]
        wk = jnp.transpose(w_hwio, (3, 0, 1, 2)).reshape(co, -1)     # (Cout, 9*Cin)
        wk = wk * scale.reshape(-1, 1)
        return wk.astype(f32), bias.reshape(-1, 1).astype(f32)

    w1, b1 = pack_conv(raw["w1"], raw["s1"], raw["b1"])
    w2, b2 = pack_conv(raw["w2"], raw["s2"], raw["b2"])
    wo, bo = pack_conv(raw["wo"], jnp.ones((1,), f32), raw["bo"])
    # Pad the 1-channel "out" conv to 8 output rows (keeps the MXU contraction
    # non-degenerate); the kernel stores only row 0.
    pad_rows = 8 - wo.shape[0]
    wo = jnp.concatenate([wo, jnp.zeros((pad_rows, wo.shape[1]), f32)], axis=0)
    bo = jnp.concatenate([bo, jnp.zeros((pad_rows, 1), f32)], axis=0)

    # Transposed-conv weights, tap-major (ky,kx): wu[co, (ky*3+kx)*Ci+ci]
    wt, su, bu = raw["wt"], raw["su"], raw["bu"]           # (Ci,Cu,3,3), (Cu,), (Cu,)
    wu = jnp.transpose(wt, (1, 2, 3, 0)).reshape(wt.shape[1], -1)
    wu = (wu * su.reshape(-1, 1)).astype(f32)
    bu = bu.reshape(-1, 1).astype(f32)

    col = jnp.arange(H * W, dtype=jnp.int32) % W
    masks = jnp.stack([(col >= 1).astype(f32), (col <= W - 2).astype(f32)], axis=0)

    return dict(masks=masks, w1=w1, b1=b1, w2=w2, b2=b2,
                wo=wo, bo=bo, wu=wu, bu=bu)


# --------------------------------- main ----------------------------------------
if __name__ == "__main__":
    c_in, c_out = 4, 8
    N, H, W = 2, 16, 16

    key = jax.random.PRNGKey(0)
    kx0, kx1, kp = jax.random.split(key, 3)
    x0 = jax.random.normal(kx0, (N, c_in, H, W), jnp.float32)
    x1 = jax.random.normal(kx1, (N, c_out // 2, 2 * H, 2 * W), jnp.float32)

    raw = init_params(kp, c_in, c_out)
    packed = pack_params(raw, H, W)

    fwd = jax.jit(up_s_forward)
    y0, y = fwd(x0, x1, packed)
    jax.block_until_ready((y0, y))

    # shape checks + numeric check against a pure-JAX (lax conv) reference
    assert y0.shape == (N, 1, H, W), y0.shape
    assert y.shape == (N, c_out, 2 * H, 2 * W), y.shape
    r0, r = ref_forward(x0, x1, raw)
    assert jnp.allclose(y0, r0, atol=2e-3, rtol=2e-3), float(jnp.max(jnp.abs(y0 - r0)))
    assert jnp.allclose(y, r, atol=2e-3, rtol=2e-3), float(jnp.max(jnp.abs(y - r)))

    print("KERNEL_OK")
</pallas_src>

<mosaic_0001>
module attributes {stable_mosaic.version = 11 : i64} {
  func.func @_up_s_fused_kernel(%arg0: i32, %arg1: memref<1x4x256xf32, #tpu.memory_space<vmem>>, %arg2: memref<2x256xf32, #tpu.memory_space<vmem>>, %arg3: memref<8x36xf32, #tpu.memory_space<vmem>>, %arg4: memref<8x1xf32, #tpu.memory_space<vmem>>, %arg5: memref<8x72xf32, #tpu.memory_space<vmem>>, %arg6: memref<8x1xf32, #tpu.memory_space<vmem>>, %arg7: memref<8x72xf32, #tpu.memory_space<vmem>>, %arg8: memref<8x1xf32, #tpu.memory_space<vmem>>, %arg9: memref<4x72xf32, #tpu.memory_space<vmem>>, %arg10: memref<4x1xf32, #tpu.memory_space<vmem>>, %arg11: memref<1x1x256xf32, #tpu.memory_space<vmem>>, %arg12: memref<1x4x4x256xf32, #tpu.memory_space<vmem>>) attributes {dimension_semantics = [#tpu.dimension_semantics<parallel>], iteration_bounds = array<i64: 2>, scalar_prefetch = 0 : i64, scratch_operands = 0 : i64, tpu.core_type = #tpu.core_type<tc>, window_params = [{transform_indices = @transform_0, window_bounds = array<i64: 1, 4, 256>}, {pipeline_mode = #tpu.pipeline_mode<synchronous>, transform_indices = @transform_1, window_bounds = array<i64: 2, 256>}, {pipeline_mode = #tpu.pipeline_mode<synchronous>, transform_indices = @transform_2, window_bounds = array<i64: 8, 36>}, {pipeline_mode = #tpu.pipeline_mode<synchronous>, transform_indices = @transform_3, window_bounds = array<i64: 8, 1>}, {pipeline_mode = #tpu.pipeline_mode<synchronous>, transform_indices = @transform_4, window_bounds = array<i64: 8, 72>}, {pipeline_mode = #tpu.pipeline_mode<synchronous>, transform_indices = @transform_5, window_bounds = array<i64: 8, 1>}, {pipeline_mode = #tpu.pipeline_mode<synchronous>, transform_indices = @transform_6, window_bounds = array<i64: 8, 72>}, {pipeline_mode = #tpu.pipeline_mode<synchronous>, transform_indices = @transform_7, window_bounds = array<i64: 8, 1>}, {pipeline_mode = #tpu.pipeline_mode<synchronous>, transform_indices = @transform_8, window_bounds = array<i64: 4, 72>}, {pipeline_mode = #tpu.pipeline_mode<synchronous>, transform_indices = @transform_9, window_bounds = array<i64: 4, 1>}, {transform_indices = @transform_10, window_bounds = array<i64: 1, 1, 256>}, {transform_indices = @transform_11, window_bounds = array<i64: 1, 4, 4, 256>}]} {
    %c0 = arith.constant 0 : index
    %c0_0 = arith.constant 0 : index
    %0 = vector.load %arg2[%c0, %c0_0] : memref<2x256xf32, #tpu.memory_space<vmem>>, vector<1x256xf32>
    %c1 = arith.constant 1 : index
    %c0_1 = arith.constant 0 : index
    %1 = vector.load %arg2[%c1, %c0_1] : memref<2x256xf32, #tpu.memory_space<vmem>>, vector<1x256xf32>
    %c0_2 = arith.constant 0 : index
    %c0_3 = arith.constant 0 : index
    %c0_4 = arith.constant 0 : index
    %2 = vector.load %arg1[%c0_2, %c0_3, %c0_4] : memref<1x4x256xf32, #tpu.memory_space<vmem>>, vector<1x4x256xf32>
    %3 = vector.shape_cast %2 : vector<1x4x256xf32> to vector<4x256xf32>
    %cst = arith.constant 0.000000e+00 : f32
    %4 = vector.broadcast %cst : f32 to vector<4x17xf32>
    %5 = tpu.concatenate %4, %3, %4 in 1 : vector<4x17xf32>, vector<4x256xf32>, vector<4x17xf32> -> vector<4x290xf32>
    %cst_5 = arith.constant 0.000000e+00 : f32
    %6 = vector.broadcast %cst_5 : f32 to vector<8x256xf32>
    %7 = vector.extract_strided_slice %5 {offsets = [0, 0], sizes = [4, 256], strides = [1, 1]} : vector<4x290xf32> to vector<4x256xf32>
    %8 = vector.broadcast %0 : vector<1x256xf32> to vector<4x256xf32>
    %9 = arith.mulf %7, %8 : vector<4x256xf32>
    %c0_6 = arith.constant 0 : index
    %c0_7 = arith.constant 0 : index
    %10 = vector.load %arg3[%c0_6, %c0_7] : memref<8x36xf32, #tpu.memory_space<vmem>>, vector<8x4xf32>
    %cst_8 = arith.constant dense<0.000000e+00> : vector<8x256xf32>
    %11 = tpu.matmul %10, %9, %cst_8 {dimension_numbers = #tpu.dot_dimension_numbers<[1], [0], [0], [1], [0, 0, 1, 1], [], []>} : vector<8x4xf32>, vector<4x256xf32>, vector<8x256xf32> -> vector<8x256xf32>
    %12 = arith.addf %6, %11 : vector<8x256xf32>
    %13 = vector.extract_strided_slice %5 {offsets = [0, 1], sizes = [4, 256], strides = [1, 1]} : vector<4x290xf32> to vector<4x256xf32>
    %c0_9 = arith.constant 0 : index
    %c4 = arith.constant 4 : index
    %14 = vector.load %arg3[%c0_9, %c4] : memref<8x36xf32, #tpu.memory_space<vmem>>, vector<8x4xf32>
    %cst_10 = arith.constant dense<0.000000e+00> : vector<8x256xf32>
    %15 = tpu.matmul %14, %13, %cst_10 {dimension_numbers = #tpu.dot_dimension_numbers<[1], [0], [0], [1], [0, 0, 1, 1], [], []>} : vector<8x4xf32>, vector<4x256xf32>, vector<8x256xf32> -> vector<8x256xf32>
    %16 = arith.addf %12, %15 : vector<8x256xf32>
    %17 = vector.extract_strided_slice %5 {offsets = [0, 2], sizes = [4, 256], strides = [1, 1]} : vector<4x290xf32> to vector<4x256xf32>
    %18 = vector.broadcast %1 : vector<1x256xf32> to vector<4x256xf32>
    %19 = arith.mulf %17, %18 : vector<4x256xf32>
    %c0_11 = arith.constant 0 : index
    %c8 = arith.constant 8 : index
    %20 = vector.load %arg3[%c0_11, %c8] : memref<8x36xf32, #tpu.memory_space<vmem>>, vector<8x4xf32>
    %cst_12 = arith.constant dense<0.000000e+00> : vector<8x256xf32>
    %21 = tpu.matmul %20, %19, %cst_12 {dimension_numbers = #tpu.dot_dimension_numbers<[1], [0], [0], [1], [0, 0, 1, 1], [], []>} : vector<8x4xf32>, vector<4x256xf32>, vector<8x256xf32> -> vector<8x256xf32>
    %22 = arith.addf %16, %21 : vector<8x256xf32>
    %23 = vector.extract_strided_slice %5 {offsets = [0, 16], sizes = [4, 256], strides = [1, 1]} : vector<4x290xf32> to vector<4x256xf32>
    %24 = vector.broadcast %0 : vector<1x256xf32> to vector<4x256xf32>
    %25 = arith.mulf %23, %24 : vector<4x256xf32>
    %c0_13 = arith.constant 0 : index
    %c12 = arith.constant 12 : index
    %26 = vector.load %arg3[%c0_13, %c12] : memref<8x36xf32, #tpu.memory_space<vmem>>, vector<8x4xf32>
    %cst_14 = arith.constant dense<0.000000e+00> : vector<8x256xf32>
    %27 = tpu.matmul %26, %25, %cst_14 {dimension_numbers = #tpu.dot_dimension_numbers<[1], [0], [0], [1], [0, 0, 1, 1], [], []>} : vector<8x4xf32>, vector<4x256xf32>, vector<8x256xf32> -> vector<8x256xf32>
    %28 = arith.addf %22, %27 : vector<8x256xf32>
    %29 = vector.extract_strided_slice %5 {offsets = [0, 17], sizes = [4, 256], strides = [1, 1]} : vector<4x290xf32> to vector<4x256xf32>
    %c0_15 = arith.constant 0 : index
    %c16 = arith.constant 16 : index
    %30 = vector.load %arg3[%c0_15, %c16] : memref<8x36xf32, #tpu.memory_space<vmem>>, vector<8x4xf32>
    %cst_16 = arith.constant dense<0.000000e+00> : vector<8x256xf32>
    %31 = tpu.matmul %30, %29, %cst_16 {dimension_numbers = #tpu.dot_dimension_numbers<[1], [0], [0], [1], [0, 0, 1, 1], [], []>} : vector<8x4xf32>, vector<4x256xf32>, vector<8x256xf32> -> vector<8x256xf32>
    %32 = arith.addf %28, %31 : vector<8x256xf32>
    %33 = vector.extract_strided_slice %5 {offsets = [0, 18], sizes = [4, 256], strides = [1, 1]} : vector<4x290xf32> to vector<4x256xf32>
    %34 = vector.broadcast %1 : vector<1x256xf32> to vector<4x256xf32>
    %35 = arith.mulf %33, %34 : vector<4x256xf32>
    %c0_17 = arith.constant 0 : index
    %c20 = arith.constant 20 : index
    %36 = vector.load %arg3[%c0_17, %c20] : memref<8x36xf32, #tpu.memory_space<vmem>>, vector<8x4xf32>
    %cst_18 = arith.constant dense<0.000000e+00> : vector<8x256xf32>
    %37 = tpu.matmul %36, %35, %cst_18 {dimension_numbers = #tpu.dot_dimension_numbers<[1], [0], [0], [1], [0, 0, 1, 1], [], []>} : vector<8x4xf32>, vector<4x256xf32>, vector<8x256xf32> -> vector<8x256xf32>
    %38 = arith.addf %32, %37 : vector<8x256xf32>
    %39 = vector.extract_strided_slice %5 {offsets = [0, 32], sizes = [4, 256], strides = [1, 1]} : vector<4x290xf32> to vector<4x256xf32>
    %40 = vector.broadcast %0 : vector<1x256xf32> to vector<4x256xf32>
    %41 = arith.mulf %39, %40 : vector<4x256xf32>
    %c0_19 = arith.constant 0 : index
    %c24 = arith.constant 24 : index
    %42 = vector.load %arg3[%c0_19, %c24] : memref<8x36xf32, #tpu.memory_space<vmem>>, vector<8x4xf32>
    %cst_20 = arith.constant dense<0.000000e+00> : vector<8x256xf32>
    %43 = tpu.matmul %42, %41, %cst_20 {dimension_numbers = #tpu.dot_dimension_numbers<[1], [0], [0], [1], [0, 0, 1, 1], [], []>} : vector<8x4xf32>, vector<4x256xf32>, vector<8x256xf32> -> vector<8x256xf32>
    %44 = arith.addf %38, %43 : vector<8x256xf32>
    %45 = vector.extract_strided_slice %5 {offsets = [0, 33], sizes = [4, 256], strides = [1, 1]} : vector<4x290xf32> to vector<4x256xf32>
    %c0_21 = arith.constant 0 : index
    %c28 = arith.constant 28 : index
    %46 = vector.load %arg3[%c0_21, %c28] : memref<8x36xf32, #tpu.memory_space<vmem>>, vector<8x4xf32>
    %cst_22 = arith.constant dense<0.000000e+00> : vector<8x256xf32>
    %47 = tpu.matmul %46, %45, %cst_22 {dimension_numbers = #tpu.dot_dimension_numbers<[1], [0], [0], [1], [0, 0, 1, 1], [], []>} : vector<8x4xf32>, vector<4x256xf32>, vector<8x256xf32> -> vector<8x256xf32>
    %48 = arith.addf %44, %47 : vector<8x256xf32>
    %49 = vector.extract_strided_slice %5 {offsets = [0, 34], sizes = [4, 256], strides = [1, 1]} : vector<4x290xf32> to vector<4x256xf32>
    %50 = vector.broadcast %1 : vector<1x256xf32> to vector<4x256xf32>
    %51 = arith.mulf %49, %50 : vector<4x256xf32>
    %c0_23 = arith.constant 0 : index
    %c32 = arith.constant 32 : index
    %52 = vector.load %arg3[%c0_23, %c32] : memref<8x36xf32, #tpu.memory_space<vmem>>, vector<8x4xf32>
    %cst_24 = arith.constant dense<0.000000e+00> : vector<8x256xf32>
    %53 = tpu.matmul %52, %51, %cst_24 {dimension_numbers = #tpu.dot_dimension_numbers<[1], [0], [0], [1], [0, 0, 1, 1], [], []>} : vector<8x4xf32>, vector<4x256xf32>, vector<8x256xf32> -> vector<8x256xf32>
    %54 = arith.addf %48, %53 : vector<8x256xf32>
    %c0_25 = arith.constant 0 : index
    %c0_26 = arith.constant 0 : index
    %55 = vector.load %arg4[%c0_25, %c0_26] : memref<8x1xf32, #tpu.memory_space<vmem>>, vector<8x1xf32>
    %56 = vector.broadcast %55 : vector<8x1xf32> to vector<8x256xf32>
    %57 = arith.addf %54, %56 : vector<8x256xf32>
    %cst_27 = arith.constant 0.000000e+00 : f32
    %58 = vector.broadcast %cst_27 : f32 to vector<8x256xf32>
    %59 = arith.maximumf %57, %58 : vector<8x256xf32>
    %cst_28 = arith.constant 0.000000e+00 : f32
    %60 = vector.broadcast %cst_28 : f32 to vector<8x17xf32>
    %61 = tpu.concatenate %60, %59, %60 in 1 : vector<8x17xf32>, vector<8x256xf32>, vector<8x17xf32> -> vector<8x290xf32>
    %cst_29 = arith.constant 0.000000e+00 : f32
    %62 = vector.broadcast %cst_29 : f32 to vector<8x256xf32>
    %63 = vector.extract_strided_slice %61 {offsets = [0, 0], sizes = [8, 256], strides = [1, 1]} : vector<8x290xf32> to vector<8x256xf32>
    %64 = vector.broadcast %0 : vector<1x256xf32> to vector<8x256xf32>
    %65 = arith.mulf %63, %64 : vector<8x256xf32>
    %c0_30 = arith.constant 0 : index
    %c0_31 = arith.constant 0 : index
    %66 = vector.load %arg5[%c0_30, %c0_31] : memref<8x72xf32, #tpu.memory_space<vmem>>, vector<8x8xf32>
    %cst_32 = arith.constant dense<0.000000e+00> : vector<8x256xf32>
    %67 = tpu.matmul %66, %65, %cst_32 {dimension_numbers = #tpu.dot_dimension_numbers<[1], [0], [0], [1], [0, 0, 1, 1], [], []>} : vector<8x8xf32>, vector<8x256xf32>, vector<8x256xf32> -> vector<8x256xf32>
    %68 = arith.addf %62, %67 : vector<8x256xf32>
    %69 = vector.extract_strided_slice %61 {offsets = [0, 1], sizes = [8, 256], strides = [1, 1]} : vector<8x290xf32> to vector<8x256xf32>
    %c0_33 = arith.constant 0 : index
    %c8_34 = arith.constant 8 : index
    %70 = vector.load %arg5[%c0_33, %c8_34] : memref<8x72xf32, #tpu.memory_space<vmem>>, vector<8x8xf32>
    %cst_35 = arith.constant dense<0.000000e+00> : vector<8x256xf32>
    %71 = tpu.matmul %70, %69, %cst_35 {dimension_numbers = #tpu.dot_dimension_numbers<[1], [0], [0], [1], [0, 0, 1, 1], [], []>} : vector<8x8xf32>, vector<8x256xf32>, vector<8x256xf32> -> vector<8x256xf32>
    %72 = arith.addf %68, %71 : vector<8x256xf32>
    %73 = vector.extract_strided_slice %61 {offsets = [0, 2], sizes = [8, 256], strides = [1, 1]} : vector<8x290xf32> to vector<8x256xf32>
    %74 = vector.broadcast %1 : vector<1x256xf32> to vector<8x256xf32>
    %75 = arith.mulf %73, %74 : vector<8x256xf32>
    %c0_36 = arith.constant 0 : index
    %c16_37 = arith.constant 16 : index
    %76 = vector.load %arg5[%c0_36, %c16_37] : memref<8x72xf32, #tpu.memory_space<vmem>>, vector<8x8xf32>
    %cst_38 = arith.constant dense<0.000000e+00> : vector<8x256xf32>
    %77 = tpu.matmul %76, %75, %cst_38 {dimension_numbers = #tpu.dot_dimension_numbers<[1], [0], [0], [1], [0, 0, 1, 1], [], []>} : vector<8x8xf32>, vector<8x256xf32>, vector<8x256xf32> -> vector<8x256xf32>
    %78 = arith.addf %72, %77 : vector<8x256xf32>
    %79 = vector.extract_strided_slice %61 {offsets = [0, 16], sizes = [8, 256], strides = [1, 1]} : vector<8x290xf32> to vector<8x256xf32>
    %80 = vector.broadcast %0 : vector<1x256xf32> to vector<8x256xf32>
    %81 = arith.mulf %79, %80 : vector<8x256xf32>
    %c0_39 = arith.constant 0 : index
    %c24_40 = arith.constant 24 : index
    %82 = vector.load %arg5[%c0_39, %c24_40] : memref<8x72xf32, #tpu.memory_space<vmem>>, vector<8x8xf32>
    %cst_41 = arith.constant dense<0.000000e+00> : vector<8x256xf32>
    %83 = tpu.matmul %82, %81, %cst_41 {dimension_numbers = #tpu.dot_dimension_numbers<[1], [0], [0], [1], [0, 0, 1, 1], [], []>} : vector<8x8xf32>, vector<8x256xf32>, vector<8x256xf32> -> vector<8x256xf32>
    %84 = arith.addf %78, %83 : vector<8x256xf32>
    %85 = vector.extract_strided_slice %61 {offsets = [0, 17], sizes = [8, 256], strides = [1, 1]} : vector<8x290xf32> to vector<8x256xf32>
    %c0_42 = arith.constant 0 : index
    %c32_43 = arith.constant 32 : index
    %86 = vector.load %arg5[%c0_42, %c32_43] : memref<8x72xf32, #tpu.memory_space<vmem>>, vector<8x8xf32>
    %cst_44 = arith.constant dense<0.000000e+00> : vector<8x256xf32>
    %87 = tpu.matmul %86, %85, %cst_44 {dimension_numbers = #tpu.dot_dimension_numbers<[1], [0], [0], [1], [0, 0, 1, 1], [], []>} : vector<8x8xf32>, vector<8x256xf32>, vector<8x256xf32> -> vector<8x256xf32>
    %88 = arith.addf %84, %87 : vector<8x256xf32>
    %89 = vector.extract_strided_slice %61 {offsets = [0, 18], sizes = [8, 256], strides = [1, 1]} : vector<8x290xf32> to vector<8x256xf32>
    %90 = vector.broadcast %1 : vector<1x256xf32> to vector<8x256xf32>
    %91 = arith.mulf %89, %90 : vector<8x256xf32>
    %c0_45 = arith.constant 0 : index
    %c40 = arith.constant 40 : index
    %92 = vector.load %arg5[%c0_45, %c40] : memref<8x72xf32, #tpu.memory_space<vmem>>, vector<8x8xf32>
    %cst_46 = arith.constant dense<0.000000e+00> : vector<8x256xf32>
    %93 = tpu.matmul %92, %91, %cst_46 {dimension_numbers = #tpu.dot_dimension_numbers<[1], [0], [0], [1], [0, 0, 1, 1], [], []>} : vector<8x8xf32>, vector<8x256xf32>, vector<8x256xf32> -> vector<8x256xf32>
    %94 = arith.addf %88, %93 : vector<8x256xf32>
    %95 = vector.extract_strided_slice %61 {offsets = [0, 32], sizes = [8, 256], strides = [1, 1]} : vector<8x290xf32> to vector<8x256xf32>
    %96 = vector.broadcast %0 : vector<1x256xf32> to vector<8x256xf32>
    %97 = arith.mulf %95, %96 : vector<8x256xf32>
    %c0_47 = arith.constant 0 : index
    %c48 = arith.constant 48 : index
    %98 = vector.load %arg5[%c0_47, %c48] : memref<8x72xf32, #tpu.memory_space<vmem>>, vector<8x8xf32>
    %cst_48 = arith.constant dense<0.000000e+00> : vector<8x256xf32>
    %99 = tpu.matmul %98, %97, %cst_48 {dimension_numbers = #tpu.dot_dimension_numbers<[1], [0], [0], [1], [0, 0, 1, 1], [], []>} : vector<8x8xf32>, vector<8x256xf32>, vector<8x256xf32> -> vector<8x256xf32>
    %100 = arith.addf %94, %99 : vector<8x256xf32>
    %101 = vector.extract_strided_slice %61 {offsets = [0, 33], sizes = [8, 256], strides = [1, 1]} : vector<8x290xf32> to vector<8x256xf32>
    %c0_49 = arith.constant 0 : index
    %c56 = arith.constant 56 : index
    %102 = vector.load %arg5[%c0_49, %c56] : memref<8x72xf32, #tpu.memory_space<vmem>>, vector<8x8xf32>
    %cst_50 = arith.constant dense<0.000000e+00> : vector<8x256xf32>
    %103 = tpu.matmul %102, %101, %cst_50 {dimension_numbers = #tpu.dot_dimension_numbers<[1], [0], [0], [1], [0, 0, 1, 1], [], []>} : vector<8x8xf32>, vector<8x256xf32>, vector<8x256xf32> -> vector<8x256xf32>
    %104 = arith.addf %100, %103 : vector<8x256xf32>
    %105 = vector.extract_strided_slice %61 {offsets = [0, 34], sizes = [8, 256], strides = [1, 1]} : vector<8x290xf32> to vector<8x256xf32>
    %106 = vector.broadcast %1 : vector<1x256xf32> to vector<8x256xf32>
    %107 = arith.mulf %105, %106 : vector<8x256xf32>
    %c0_51 = arith.constant 0 : index
    %c64 = arith.constant 64 : index
    %108 = vector.load %arg5[%c0_51, %c64] : memref<8x72xf32, #tpu.memory_space<vmem>>, vector<8x8xf32>
    %cst_52 = arith.constant dense<0.000000e+00> : vector<8x256xf32>
    %109 = tpu.matmul %108, %107, %cst_52 {dimension_numbers = #tpu.dot_dimension_numbers<[1], [0], [0], [1], [0, 0, 1, 1], [], []>} : vector<8x8xf32>, vector<8x256xf32>, vector<8x256xf32> -> vector<8x256xf32>
    %110 = arith.addf %104, %109 : vector<8x256xf32>
    %c0_53 = arith.constant 0 : index
    %c0_54 = arith.constant 0 : index
    %111 = vector.load %arg6[%c0_53, %c0_54] : memref<8x1xf32, #tpu.memory_space<vmem>>, vector<8x1xf32>
    %112 = vector.broadcast %111 : vector<8x1xf32> to vector<8x256xf32>
    %113 = arith.addf %110, %112 : vector<8x256xf32>
    %cst_55 = arith.constant 0.000000e+00 : f32
    %114 = vector.broadcast %cst_55 : f32 to vector<8x256xf32>
    %115 = arith.maximumf %113, %114 : vector<8x256xf32>
    %cst_56 = arith.constant 0.000000e+00 : f32
    %116 = vector.broadcast %cst_56 : f32 to vector<8x17xf32>
    %117 = tpu.concatenate %116, %115, %116 in 1 : vector<8x17xf32>, vector<8x256xf32>, vector<8x17xf32> -> vector<8x290xf32>
    %cst_57 = arith.constant 0.000000e+00 : f32
    %118 = vector.broadcast %cst_57 : f32 to vector<8x256xf32>
    %119 = vector.extract_strided_slice %117 {offsets = [0, 0], sizes = [8, 256], strides = [1, 1]} : vector<8x290xf32> to vector<8x256xf32>
    %120 = vector.broadcast %0 : vector<1x256xf32> to vector<8x256xf32>
    %121 = arith.mulf %119, %120 : vector<8x256xf32>
    %c0_58 = arith.constant 0 : index
    %c0_59 = arith.constant 0 : index
    %122 = vector.load %arg7[%c0_58, %c0_59] : memref<8x72xf32, #tpu.memory_space<vmem>>, vector<8x8xf32>
    %cst_60 = arith.constant dense<0.000000e+00> : vector<8x256xf32>
    %123 = tpu.matmul %122, %121, %cst_60 {dimension_numbers = #tpu.dot_dimension_numbers<[1], [0], [0], [1], [0, 0, 1, 1], [], []>} : vector<8x8xf32>, vector<8x256xf32>, vector<8x256xf32> -> vector<8x256xf32>
    %124 = arith.addf %118, %123 : vector<8x256xf32>
    %125 = vector.extract_strided_slice %117 {offsets = [0, 1], sizes = [8, 256], strides = [1, 1]} : vector<8x290xf32> to vector<8x256xf32>
    %c0_61 = arith.constant 0 : index
    %c8_62 = arith.constant 8 : index
    %126 = vector.load %arg7[%c0_61, %c8_62] : memref<8x72xf32, #tpu.memory_space<vmem>>, vector<8x8xf32>
    %cst_63 = arith.constant dense<0.000000e+00> : vector<8x256xf32>
    %127 = tpu.matmul %126, %125, %cst_63 {dimension_numbers = #tpu.dot_dimension_numbers<[1], [0], [0], [1], [0, 0, 1, 1], [], []>} : vector<8x8xf32>, vector<8x256xf32>, vector<8x256xf32> -> vector<8x256xf32>
    %128 = arith.addf %124, %127 : vector<8x256xf32>
    %129 = vector.extract_strided_slice %117 {offsets = [0, 2], sizes = [8, 256], strides = [1, 1]} : vector<8x290xf32> to vector<8x256xf32>
    %130 = vector.broadcast %1 : vector<1x256xf32> to vector<8x256xf32>
    %131 = arith.mulf %129, %130 : vector<8x256xf32>
    %c0_64 = arith.constant 0 : index
    %c16_65 = arith.constant 16 : index
    %132 = vector.load %arg7[%c0_64, %c16_65] : memref<8x72xf32, #tpu.memory_space<vmem>>, vector<8x8xf32>
    %cst_66 = arith.constant dense<0.000000e+00> : vector<8x256xf32>
    %133 = tpu.matmul %132, %131, %cst_66 {dimension_numbers = #tpu.dot_dimension_numbers<[1], [0], [0], [1], [0, 0, 1, 1], [], []>} : vector<8x8xf32>, vector<8x256xf32>, vector<8x256xf32> -> vector<8x256xf32>
    %134 = arith.addf %128, %133 : vector<8x256xf32>
    %135 = vector.extract_strided_slice %117 {offsets = [0, 16], sizes = [8, 256], strides = [1, 1]} : vector<8x290xf32> to vector<8x256xf32>
    %136 = vector.broadcast %0 : vector<1x256xf32> to vector<8x256xf32>
    %137 = arith.mulf %135, %136 : vector<8x256xf32>
    %c0_67 = arith.constant 0 : index
    %c24_68 = arith.constant 24 : index
    %138 = vector.load %arg7[%c0_67, %c24_68] : memref<8x72xf32, #tpu.memory_space<vmem>>, vector<8x8xf32>
    %cst_69 = arith.constant dense<0.000000e+00> : vector<8x256xf32>
    %139 = tpu.matmul %138, %137, %cst_69 {dimension_numbers = #tpu.dot_dimension_numbers<[1], [0], [0], [1], [0, 0, 1, 1], [], []>} : vector<8x8xf32>, vector<8x256xf32>, vector<8x256xf32> -> vector<8x256xf32>
    %140 = arith.addf %134, %139 : vector<8x256xf32>
    %141 = vector.extract_strided_slice %117 {offsets = [0, 17], sizes = [8, 256], strides = [1, 1]} : vector<8x290xf32> to vector<8x256xf32>
    %c0_70 = arith.constant 0 : index
    %c32_71 = arith.constant 32 : index
    %142 = vector.load %arg7[%c0_70, %c32_71] : memref<8x72xf32, #tpu.memory_space<vmem>>, vector<8x8xf32>
    %cst_72 = arith.constant dense<0.000000e+00> : vector<8x256xf32>
    %143 = tpu.matmul %142, %141, %cst_72 {dimension_numbers = #tpu.dot_dimension_numbers<[1], [0], [0], [1], [0, 0, 1, 1], [], []>} : vector<8x8xf32>, vector<8x256xf32>, vector<8x256xf32> -> vector<8x256xf32>
    %144 = arith.addf %140, %143 : vector<8x256xf32>
    %145 = vector.extract_strided_slice %117 {offsets = [0, 18], sizes = [8, 256], strides = [1, 1]} : vector<8x290xf32> to vector<8x256xf32>
    %146 = vector.broadcast %1 : vector<1x256xf32> to vector<8x256xf32>
    %147 = arith.mulf %145, %146 : vector<8x256xf32>
    %c0_73 = arith.constant 0 : index
    %c40_74 = arith.constant 40 : index
    %148 = vector.load %arg7[%c0_73, %c40_74] : memref<8x72xf32, #tpu.memory_space<vmem>>, vector<8x8xf32>
    %cst_75 = arith.constant dense<0.000000e+00> : vector<8x256xf32>
    %149 = tpu.matmul %148, %147, %cst_75 {dimension_numbers = #tpu.dot_dimension_numbers<[1], [0], [0], [1], [0, 0, 1, 1], [], []>} : vector<8x8xf32>, vector<8x256xf32>, vector<8x256xf32> -> vector<8x256xf32>
    %150 = arith.addf %144, %149 : vector<8x256xf32>
    %151 = vector.extract_strided_slice %117 {offsets = [0, 32], sizes = [8, 256], strides = [1, 1]} : vector<8x290xf32> to vector<8x256xf32>
    %152 = vector.broadcast %0 : vector<1x256xf32> to vector<8x256xf32>
    %153 = arith.mulf %151, %152 : vector<8x256xf32>
    %c0_76 = arith.constant 0 : index
    %c48_77 = arith.constant 48 : index
    %154 = vector.load %arg7[%c0_76, %c48_77] : memref<8x72xf32, #tpu.memory_space<vmem>>, vector<8x8xf32>
    %cst_78 = arith.constant dense<0.000000e+00> : vector<8x256xf32>
    %155 = tpu.matmul %154, %153, %cst_78 {dimension_numbers = #tpu.dot_dimension_numbers<[1], [0], [0], [1], [0, 0, 1, 1], [], []>} : vector<8x8xf32>, vector<8x256xf32>, vector<8x256xf32> -> vector<8x256xf32>
    %156 = arith.addf %150, %155 : vector<8x256xf32>
    %157 = vector.extract_strided_slice %117 {offsets = [0, 33], sizes = [8, 256], strides = [1, 1]} : vector<8x290xf32> to vector<8x256xf32>
    %c0_79 = arith.constant 0 : index
    %c56_80 = arith.constant 56 : index
    %158 = vector.load %arg7[%c0_79, %c56_80] : memref<8x72xf32, #tpu.memory_space<vmem>>, vector<8x8xf32>
    %cst_81 = arith.constant dense<0.000000e+00> : vector<8x256xf32>
    %159 = tpu.matmul %158, %157, %cst_81 {dimension_numbers = #tpu.dot_dimension_numbers<[1], [0], [0], [1], [0, 0, 1, 1], [], []>} : vector<8x8xf32>, vector<8x256xf32>, vector<8x256xf32> -> vector<8x256xf32>
    %160 = arith.addf %156, %159 : vector<8x256xf32>
    %161 = vector.extract_strided_slice %117 {offsets = [0, 34], sizes = [8, 256], strides = [1, 1]} : vector<8x290xf32> to vector<8x256xf32>
    %162 = vector.broadcast %1 : vector<1x256xf32> to vector<8x256xf32>
    %163 = arith.mulf %161, %162 : vector<8x256xf32>
    %c0_82 = arith.constant 0 : index
    %c64_83 = arith.constant 64 : index
    %164 = vector.load %arg7[%c0_82, %c64_83] : memref<8x72xf32, #tpu.memory_space<vmem>>, vector<8x8xf32>
    %cst_84 = arith.constant dense<0.000000e+00> : vector<8x256xf32>
    %165 = tpu.matmul %164, %163, %cst_84 {dimension_numbers = #tpu.dot_dimension_numbers<[1], [0], [0], [1], [0, 0, 1, 1], [], []>} : vector<8x8xf32>, vector<8x256xf32>, vector<8x256xf32> -> vector<8x256xf32>
    %166 = arith.addf %160, %165 : vector<8x256xf32>
    %c0_85 = arith.constant 0 : index
    %c0_86 = arith.constant 0 : index
    %167 = vector.load %arg8[%c0_85, %c0_86] : memref<8x1xf32, #tpu.memory_space<vmem>>, vector<8x1xf32>
    %168 = vector.broadcast %167 : vector<8x1xf32> to vector<8x256xf32>
    %169 = arith.addf %166, %168 : vector<8x256xf32>
    %170 = arith.negf %169 : vector<8x256xf32>
    %171 = math.exp %170 : vector<8x256xf32>
    %cst_87 = arith.constant 1.000000e+00 : f32
    %172 = vector.broadcast %cst_87 : f32 to vector<8x256xf32>
    %173 = arith.addf %172, %171 : vector<8x256xf32>
    %174 = arith.divf %172, %173 : vector<8x256xf32>
    %175 = vector.extract_strided_slice %174 {offsets = [0, 0], sizes = [1, 256], strides = [1, 1]} : vector<8x256xf32> to vector<1x256xf32>
    %c0_88 = arith.constant 0 : index
    %c0_89 = arith.constant 0 : index
    %c0_90 = arith.constant 0 : index
    %176 = vector.load %arg11[%c0_88, %c0_89, %c0_90] : memref<1x1x256xf32, #tpu.memory_space<vmem>>, vector<1x1x256xf32>
    %177 = vector.shape_cast %176 : vector<1x1x256xf32> to vector<1x256xf32>
    %178 = vector.shape_cast %175 : vector<1x256xf32> to vector<1x1x256xf32>
    tpu.vector_store %arg11[%c0_88, %c0_89, %c0_90], %178 {strides = array<i32>} : memref<1x1x256xf32, #tpu.memory_space<vmem>>, vector<1x1x256xf32>,
    %cst_91 = arith.constant 0.000000e+00 : f32
    %179 = vector.broadcast %cst_91 : f32 to vector<8x17xf32>
    %180 = tpu.concatenate %179, %115, %179 in 1 : vector<8x17xf32>, vector<8x256xf32>, vector<8x17xf32> -> vector<8x290xf32>
    %181 = vector.extract_strided_slice %180 {offsets = [0, 18], sizes = [8, 256], strides = [1, 1]} : vector<8x290xf32> to vector<8x256xf32>
    %182 = vector.broadcast %1 : vector<1x256xf32> to vector<8x256xf32>
    %183 = arith.mulf %181, %182 : vector<8x256xf32>
    %184 = vector.extract_strided_slice %180 {offsets = [0, 33], sizes = [8, 256], strides = [1, 1]} : vector<8x290xf32> to vector<8x256xf32>
    %185 = vector.extract_strided_slice %180 {offsets = [0, 34], sizes = [8, 256], strides = [1, 1]} : vector<8x290xf32> to vector<8x256xf32>
    %186 = vector.broadcast %1 : vector<1x256xf32> to vector<8x256xf32>
    %187 = arith.mulf %185, %186 : vector<8x256xf32>
    %c0_92 = arith.constant 0 : index
    %c0_93 = arith.constant 0 : index
    %188 = vector.load %arg10[%c0_92, %c0_93] : memref<4x1xf32, #tpu.memory_space<vmem>>, vector<4x1xf32>
    %c0_94 = arith.constant 0 : index
    %c32_95 = arith.constant 32 : index
    %189 = vector.load %arg9[%c0_94, %c32_95] : memref<4x72xf32, #tpu.memory_space<vmem>>, vector<4x8xf32>
    %cst_96 = arith.constant dense<0.000000e+00> : vector<4x256xf32>
    %190 = tpu.matmul %189, %115, %cst_96 {dimension_numbers = #tpu.dot_dimension_numbers<[1], [0], [0], [1], [0, 0, 1, 1], [], []>} : vector<4x8xf32>, vector<8x256xf32>, vector<4x256xf32> -> vector<4x256xf32>
    %191 = vector.broadcast %188 : vector<4x1xf32> to vector<4x256xf32>
    %192 = arith.addf %190, %191 : vector<4x256xf32>
    %cst_97 = arith.constant 0.000000e+00 : f32
    %193 = vector.broadcast %cst_97 : f32 to vector<4x256xf32>
    %194 = arith.maximumf %192, %193 : vector<4x256xf32>
    %c0_98 = arith.constant 0 : index
    %c0_99 = arith.constant 0 : index
    %c0_100 = arith.constant 0 : index
    %c0_101 = arith.constant 0 : index
    %195 = vector.load %arg12[%c0_98, %c0_99, %c0_100, %c0_101] : memref<1x4x4x256xf32, #tpu.memory_space<vmem>>, vector<1x1x4x256xf32>
    %196 = vector.shape_cast %195 : vector<1x1x4x256xf32> to vector<4x256xf32>
    %197 = vector.shape_cast %194 : vector<4x256xf32> to vector<1x1x4x256xf32>
    tpu.vector_store %arg12[%c0_98, %c0_99, %c0_100, %c0_101], %197 {strides = array<i32>} : memref<1x4x4x256xf32, #tpu.memory_space<vmem>>, vector<1x1x4x256xf32>,
    %c0_102 = arith.constant 0 : index
    %c40_103 = arith.constant 40 : index
    %198 = vector.load %arg9[%c0_102, %c40_103] : memref<4x72xf32, #tpu.memory_space<vmem>>, vector<4x8xf32>
    %cst_104 = arith.constant dense<0.000000e+00> : vector<4x256xf32>
    %199 = tpu.matmul %198, %115, %cst_104 {dimension_numbers = #tpu.dot_dimension_numbers<[1], [0], [0], [1], [0, 0, 1, 1], [], []>} : vector<4x8xf32>, vector<8x256xf32>, vector<4x256xf32> -> vector<4x256xf32>
    %c0_105 = arith.constant 0 : index
    %c24_106 = arith.constant 24 : index
    %200 = vector.load %arg9[%c0_105, %c24_106] : memref<4x72xf32, #tpu.memory_space<vmem>>, vector<4x8xf32>
    %cst_107 = arith.constant dense<0.000000e+00> : vector<4x256xf32>
    %201 = tpu.matmul %200, %183, %cst_107 {dimension_numbers = #tpu.dot_dimension_numbers<[1], [0], [0], [1], [0, 0, 1, 1], [], []>} : vector<4x8xf32>, vector<8x256xf32>, vector<4x256xf32> -> vector<4x256xf32>
    %202 = arith.addf %199, %201 : vector<4x256xf32>
    %203 = vector.broadcast %188 : vector<4x1xf32> to vector<4x256xf32>
    %204 = arith.addf %202, %203 : vector<4x256xf32>
    %cst_108 = arith.constant 0.000000e+00 : f32
    %205 = vector.broadcast %cst_108 : f32 to vector<4x256xf32>
    %206 = arith.maximumf %204, %205 : vector<4x256xf32>
    %c0_109 = arith.constant 0 : index
    %c1_110 = arith.constant 1 : index
    %c0_111 = arith.constant 0 : index
    %c0_112 = arith.constant 0 : index
    %207 = vector.load %arg12[%c0_109, %c1_110, %c0_111, %c0_112] : memref<1x4x4x256xf32, #tpu.memory_space<vmem>>, vector<1x1x4x256xf32>
    %208 = vector.shape_cast %207 : vector<1x1x4x256xf32> to vector<4x256xf32>
    %209 = vector.shape_cast %206 : vector<4x256xf32> to vector<1x1x4x256xf32>
    tpu.vector_store %arg12[%c0_109, %c1_110, %c0_111, %c0_112], %209 {strides = array<i32>} : memref<1x4x4x256xf32, #tpu.memory_space<vmem>>, vector<1x1x4x256xf32>,
    %c0_113 = arith.constant 0 : index
    %c56_114 = arith.constant 56 : index
    %210 = vector.load %arg9[%c0_113, %c56_114] : memref<4x72xf32, #tpu.memory_space<vmem>>, vector<4x8xf32>
    %cst_115 = arith.constant dense<0.000000e+00> : vector<4x256xf32>
    %211 = tpu.matmul %210, %115, %cst_115 {dimension_numbers = #tpu.dot_dimension_numbers<[1], [0], [0], [1], [0, 0, 1, 1], [], []>} : vector<4x8xf32>, vector<8x256xf32>, vector<4x256xf32> -> vector<4x256xf32>
    %c0_116 = arith.constant 0 : index
    %c8_117 = arith.constant 8 : index
    %212 = vector.load %arg9[%c0_116, %c8_117] : memref<4x72xf32, #tpu.memory_space<vmem>>, vector<4x8xf32>
    %cst_118 = arith.constant dense<0.000000e+00> : vector<4x256xf32>
    %213 = tpu.matmul %212, %184, %cst_118 {dimension_numbers = #tpu.dot_dimension_numbers<[1], [0], [0], [1], [0, 0, 1, 1], [], []>} : vector<4x8xf32>, vector<8x256xf32>, vector<4x256xf32> -> vector<4x256xf32>
    %214 = arith.addf %211, %213 : vector<4x256xf32>
    %215 = vector.broadcast %188 : vector<4x1xf32> to vector<4x256xf32>
    %216 = arith.addf %214, %215 : vector<4x256xf32>
    %cst_119 = arith.constant 0.000000e+00 : f32
    %217 = vector.broadcast %cst_119 : f32 to vector<4x256xf32>
    %218 = arith.maximumf %216, %217 : vector<4x256xf32>
    %c0_120 = arith.constant 0 : index
    %c2 = arith.constant 2 : index
    %c0_121 = arith.constant 0 : index
    %c0_122 = arith.constant 0 : index
    %219 = vector.load %arg12[%c0_120, %c2, %c0_121, %c0_122] : memref<1x4x4x256xf32, #tpu.memory_space<vmem>>, vector<1x1x4x256xf32>
    %220 = vector.shape_cast %219 : vector<1x1x4x256xf32> to vector<4x256xf32>
    %221 = vector.shape_cast %218 : vector<4x256xf32> to vector<1x1x4x256xf32>
    tpu.vector_store %arg12[%c0_120, %c2, %c0_121, %c0_122], %221 {strides = array<i32>} : memref<1x4x4x256xf32, #tpu.memory_space<vmem>>, vector<1x1x4x256xf32>,
    %c0_123 = arith.constant 0 : index
    %c64_124 = arith.constant 64 : index
    %222 = vector.load %arg9[%c0_123, %c64_124] : memref<4x72xf32, #tpu.memory_space<vmem>>, vector<4x8xf32>
    %cst_125 = arith.constant dense<0.000000e+00> : vector<4x256xf32>
    %223 = tpu.matmul %222, %115, %cst_125 {dimension_numbers = #tpu.dot_dimension_numbers<[1], [0], [0], [1], [0, 0, 1, 1], [], []>} : vector<4x8xf32>, vector<8x256xf32>, vector<4x256xf32> -> vector<4x256xf32>
    %c0_126 = arith.constant 0 : index
    %c48_127 = arith.constant 48 : index
    %224 = vector.load %arg9[%c0_126, %c48_127] : memref<4x72xf32, #tpu.memory_space<vmem>>, vector<4x8xf32>
    %cst_128 = arith.constant dense<0.000000e+00> : vector<4x256xf32>
    %225 = tpu.matmul %224, %183, %cst_128 {dimension_numbers = #tpu.dot_dimension_numbers<[1], [0], [0], [1], [0, 0, 1, 1], [], []>} : vector<4x8xf32>, vector<8x256xf32>, vector<4x256xf32> -> vector<4x256xf32>
    %226 = arith.addf %223, %225 : vector<4x256xf32>
    %c0_129 = arith.constant 0 : index
    %c16_130 = arith.constant 16 : index
    %227 = vector.load %arg9[%c0_129, %c16_130] : memref<4x72xf32, #tpu.memory_space<vmem>>, vector<4x8xf32>
    %cst_131 = arith.constant dense<0.000000e+00> : vector<4x256xf32>
    %228 = tpu.matmul %227, %184, %cst_131 {dimension_numbers = #tpu.dot_dimension_numbers<[1], [0], [0], [1], [0, 0, 1, 1], [], []>} : vector<4x8xf32>, vector<8x256xf32>, vector<4x256xf32> -> vector<4x256xf32>
    %229 = arith.addf %226, %228 : vector<4x256xf32>
    %c0_132 = arith.constant 0 : index
    %c0_133 = arith.constant 0 : index
    %230 = vector.load %arg9[%c0_132, %c0_133] : memref<4x72xf32, #tpu.memory_space<vmem>>, vector<4x8xf32>
    %cst_134 = arith.constant dense<0.000000e+00> : vector<4x256xf32>
    %231 = tpu.matmul %230, %187, %cst_134 {dimension_numbers = #tpu.dot_dimension_numbers<[1], [0], [0], [1], [0, 0, 1, 1], [], []>} : vector<4x8xf32>, vector<8x256xf32>, vector<4x256xf32> -> vector<4x256xf32>
    %232 = arith.addf %229, %231 : vector<4x256xf32>
    %233 = vector.broadcast %188 : vector<4x1xf32> to vector<4x256xf32>
    %234 = arith.addf %232, %233 : vector<4x256xf32>
    %cst_135 = arith.constant 0.000000e+00 : f32
    %235 = vector.broadcast %cst_135 : f32 to vector<4x256xf32>
    %236 = arith.maximumf %234, %235 : vector<4x256xf32>
    %c0_136 = arith.constant 0 : index
    %c3 = arith.constant 3 : index
    %c0_137 = arith.constant 0 : index
    %c0_138 = arith.constant 0 : index
    %237 = vector.load %arg12[%c0_136, %c3, %c0_137, %c0_138] : memref<1x4x4x256xf32, #tpu.memory_space<vmem>>, vector<1x1x4x256xf32>
    %238 = vector.shape_cast %237 : vector<1x1x4x256xf32> to vector<4x256xf32>
    %239 = vector.shape_cast %236 : vector<4x256xf32> to vector<1x1x4x256xf32>
    tpu.vector_store %arg12[%c0_136, %c3, %c0_137, %c0_138], %239 {strides = array<i32>} : memref<1x4x4x256xf32, #tpu.memory_space<vmem>>, vector<1x1x4x256xf32>,
    return
  }
  func.func @transform_0(%arg0: i32) -> (i32, i32, i32) {
    %c0_i32 = arith.constant 0 : i32
    %c0_i32_0 = arith.constant 0 : i32
    %c0_i32_1 = arith.constant 0 : i32
    return %arg0, %c0_i32, %c0_i32_0 : i32, i32, i32
  }
  func.func @transform_1(%arg0: i32) -> (i32, i32) {
    %c0_i32 = arith.constant 0 : i32
    %c0_i32_0 = arith.constant 0 : i32
    %c0_i32_1 = arith.constant 0 : i32
    return %c0_i32, %c0_i32_0 : i32, i32
  }
  func.func @transform_2(%arg0: i32) -> (i32, i32) {
    %c0_i32 = arith.constant 0 : i32
    %c0_i32_0 = arith.constant 0 : i32
    %c0_i32_1 = arith.constant 0 : i32
    return %c0_i32, %c0_i32_0 : i32, i32
  }
  func.func @transform_3(%arg0: i32) -> (i32, i32) {
    %c0_i32 = arith.constant 0 : i32
    %c0_i32_0 = arith.constant 0 : i32
    %c0_i32_1 = arith.constant 0 : i32
    return %c0_i32, %c0_i32_0 : i32, i32
  }
  func.func @transform_4(%arg0: i32) -> (i32, i32) {
    %c0_i32 = arith.constant 0 : i32
    %c0_i32_0 = arith.constant 0 : i32
    %c0_i32_1 = arith.constant 0 : i32
    return %c0_i32, %c0_i32_0 : i32, i32
  }
  func.func @transform_5(%arg0: i32) -> (i32, i32) {
    %c0_i32 = arith.constant 0 : i32
    %c0_i32_0 = arith.constant 0 : i32
    %c0_i32_1 = arith.constant 0 : i32
    return %c0_i32, %c0_i32_0 : i32, i32
  }
  func.func @transform_6(%arg0: i32) -> (i32, i32) {
    %c0_i32 = arith.constant 0 : i32
    %c0_i32_0 = arith.constant 0 : i32
    %c0_i32_1 = arith.constant 0 : i32
    return %c0_i32, %c0_i32_0 : i32, i32
  }
  func.func @transform_7(%arg0: i32) -> (i32, i32) {
    %c0_i32 = arith.constant 0 : i32
    %c0_i32_0 = arith.constant 0 : i32
    %c0_i32_1 = arith.constant 0 : i32
    return %c0_i32, %c0_i32_0 : i32, i32
  }
  func.func @transform_8(%arg0: i32) -> (i32, i32) {
    %c0_i32 = arith.constant 0 : i32
    %c0_i32_0 = arith.constant 0 : i32
    %c0_i32_1 = arith.constant 0 : i32
    return %c0_i32, %c0_i32_0 : i32, i32
  }
  func.func @transform_9(%arg0: i32) -> (i32, i32) {
    %c0_i32 = arith.constant 0 : i32
    %c0_i32_0 = arith.constant 0 : i32
    %c0_i32_1 = arith.constant 0 : i32
    return %c0_i32, %c0_i32_0 : i32, i32
  }
  func.func @transform_10(%arg0: i32) -> (i32, i32, i32) {
    %c0_i32 = arith.constant 0 : i32
    %c0_i32_0 = arith.constant 0 : i32
    %c0_i32_1 = arith.constant 0 : i32
    return %arg0, %c0_i32, %c0_i32_0 : i32, i32, i32
  }
  func.func @transform_11(%arg0: i32) -> (i32, i32, i32, i32) {
    %c0_i32 = arith.constant 0 : i32
    %c0_i32_0 = arith.constant 0 : i32
    %c0_i32_1 = arith.constant 0 : i32
    %c0_i32_2 = arith.constant 0 : i32
    return %arg0, %c0_i32, %c0_i32_0, %c0_i32_1 : i32, i32, i32, i32
  }
}

</mosaic_0001>

<bundles_post_ra>
// kernel: up_s_forward.1
= control target key start
LH: loop header
LB: loop body
LE: loop exit
PB: predicated region body
PF: predicated region fallthrough
CT: control target
= control target key end

     0   :  { %s3042_s17 = smov 0   ;;  %s3552_s0 = inlined_call_operand.vmem [shape: f32[2,4,256], index: 0, kind: input, shape index: {}]   ;;  %s3553_s1 = inlined_call_operand.vmem [shape: f32[2,256], index: 1, kind: input, shape index: {}]   ;;  %s3554_s2 = inlined_call_operand.vmem [shape: f32[8,36], index: 2, kind: input, shape index: {}]   ;;  %s3555_s3 = inlined_call_operand.vmem [shape: f32[8,1], index: 3, kind: input, shape index: {}]   ;;  %s3556_s4 = inlined_call_operand.vmem [shape: f32[8,72], index: 4, kind: input, shape index: {}]   ;;  %s3557_s5 = inlined_call_operand.vmem [shape: f32[8,1], index: 5, kind: input, shape index: {}]   ;;  %s3558_s6 = inlined_call_operand.vmem [shape: f32[8,72], index: 6, kind: input, shape index: {}]   ;;  %s3559_s7 = inlined_call_operand.vmem [shape: f32[8,1], index: 7, kind: input, shape index: {}]   ;;  %s3560_s8 = inlined_call_operand.vmem [shape: f32[4,72], index: 8, kind: input, shape index: {}]   ;;  %s3561_s9 = inlined_call_operand.vmem [shape: f32[4,1], index: 9, kind: input, shape index: {}]   ;;  %s3562_s10 = inlined_call_operand.vmem [shape: f32[2,1,256], index: 10, kind: output, shape index: {0}]   ;;  %s3563_s11 = inlined_call_operand.vmem [shape: f32[2,4,4,256], index: 11, kind: output, shape index: {1}]  }
   0x1 LB: > { %s2715_s18 = sadd.s32 4294967295, %s2955_s17   ;;  %p2719_p0 = scmp.ge.s32.totalorder %s2955_s17, 1  ;;  %s2955_s17 = sphi %s3042_s17, %s22_s17  }
   0x2   : > { %p340_p1 = scmp.lt.s32.totalorder %s2955_s17, 3 }
   0x4   : > { %p341_p2 = pnand %p2719_p0, %p340_p1 }
   0x5   : > { %p384_p3 = scmp.lt.s32.totalorder (!%p341_p2), %s2715_s18, 1  ;;  %s2957_s23 = smov (!%p341_p2), 2  }
   0x6   : > { %344 = sbr.rel (%p341_p2) target bundleno = 1327 (0x52f), region = 60  ;;  %s2958_s28 = smov (!%p341_p2), 16  }
   0x7   : > { %s2959_s29 = smov (!%p341_p2), 17   ;;  %s2960_s30 = smov (!%p341_p2), 18  }
   0x8   : > { %s2961_s12 = smov (!%p341_p2), 32   ;;  %s2962_s13 = smov (!%p341_p2), 34  }
   0x9   : > { %s2963_s16 = smov (!%p341_p2), 120   ;;  %s2964_s19 = smov (!%p341_p2), 116  }
   0xa   : > { %s2965_s20 = smov (!%p341_p2), 108   ;;  %s2966_s21 = smov (!%p341_p2), 104  }
   0xb   : > { %v2725_v0 = vld [vmem:[%s3553_s1 + $0x1] ss:$2 sm:$0x3]  ;;  %s3567_s18 = smov (!%p384_p3, %s2715_s18), 1  ;;  %s2967_s22 = smov 124   ;;  %vm410_vm0 = vcmask 138240  }
   0xc   : > { %v536_v1 = vperm.slane %v2725_v0, 0  ;;  %v398_v2 = vld [vmem:[%s3553_s1] ss:$2 sm:$0x3]  ;;  %s2823_s24 = sshll.u32 %s3567_s18, 3  ;;  %v537_v5 = vperm.slane %v2725_v0, 1 }
   0xd   : > { %v3058_v3 = vperm.slane %v398_v2, 0  ;;  %s388_s27 = scalar_lea.vmem %s3552_s0, %s2823_s24  ;;  %v3065_v6 = vperm.slane %v398_v2, 1  ;;  %v3074_v9 = vld [vmem:[%s3554_s2] sm:$0xff]  ;;  %s2969_s24 = smov 100   ;;  %vm442_vm1 = vcmask 1043456   ;;  %vm542_vm2 = vcmask 15360  }
   0xe   : > { %538 = vrot.lane.b32.xlu1 %v536_v1, %s2957_s23  ;;  %v401_v4 = vld [vmem:[%s388_s27] sm:$0xff]  ;;  %s2970_s25 = smov 127   ;;  %s2971_s26 = smov 111   ;;  %vm616_vm3 = vcmask 130048   ;;  %vm823_vm4 = vcmask 261120   ;;  %vm749_vm5 = vcmask 146432  }
   0xf   : > { %612 = vrot.lane.b32.xlu2 %v3058_v3, %s2958_s28  ;;  %403 = vst [vmem:[#allocation1] ss:$2 sm:$0xff] %v401_v4  ;;  %s2972_s27 = smov 95   ;;  %vm956_vm6 = vcmask 277504   ;;  %vm439_vm7 = vcmask 31744   ;;  %vm436_vm8 = vcmask 1039360  }
  0x10   : > { %vm561_vm9 = vcmask 1031168   ;;  %vm694_vm10 = vcmask 908288   ;;  %vm635_vm11 = vcmask 916480   ;;  %vm842_vm12 = vcmask 785408   ;;  %s2980_s14 = smov 64   ;;  %s2981_s15 = smov 72  }
  0x11   : > { %vm768_vm13 = vcmask 900096   ;;  %vm901_vm14 = vcmask 777216   ;;  %vm975_vm15 = vcmask 769024  }
  0x16   : > { %540 = vrot.lane.b32.xlu1 %v537_v5, %s2957_s23  ;;  %v404_v7 = vld.sshfl [vmem:[#allocation1] sm:$0xff pattern:$0x75316420]  ;;  %v405_v8 = vld.sshfl [vmem:[#allocation1 + $0x8] sm:$0xff pattern:$0x75316420] }
  0x17   : > { %614 = vrot.lane.b32.xlu2 %v3065_v6, %s2958_s28  ;;  %406 = vrot.lane.b32.xlu0 %v404_v7, %s2959_s29  ;;  %s2968_s23 = smov 112   ;;  %s2973_s28 = smov 126  }
  0x1e   : > { %747 = vrot.lane.b32.xlu1 %v537_v5, %s2960_s30 }
  0x1f   : > { %819 = vrot.lane.b32.xlu2 %v3058_v3, %s2961_s12  ;;  %408 = vrot.lane.b32.xlu0 %v405_v8, %s2959_s29 }
  0x26   : > { %952 = vrot.lane.b32.xlu1 %v536_v1, %s2962_s13 }
  0x27   : > { %954 = vrot.lane.b32.xlu2 %v537_v5, %s2962_s13  ;;  %745 = vrot.lane.b32.xlu0 %v536_v1, %s2960_s30  ;;  %s2974_s30 = smov 110   ;;  %s2976_s13 = smov 94  }
  0x2e   : > { %550 = vrot.lane.b32.xlu1 %v3074_v9, %s2963_s16 }
  0x2f   : > { %624 = vrot.lane.b32.xlu2 %v3074_v9, %s2964_s19  ;;  %821 = vrot.lane.b32.xlu0 %v3065_v6, %s2961_s12  ;;  %s2975_s12 = smov 96  }
  0x36   : > { %757 = vrot.lane.b32.xlu1 %v3074_v9, %s2965_s20 }
  0x37   : > { %831 = vrot.lane.b32.xlu2 %v3074_v9, %s2966_s21  ;;  %426 = vrot.lane.b32.xlu0 %v3074_v9, %s2967_s22  ;;  %s2978_s22 = smov 80  }
  0x3f   : > { %686 = vrot.lane.b32.xlu0 %v3074_v9, %s2968_s23 }
  0x47   : > { %893 = vrot.lane.b32.xlu0 %v3074_v9, %s2969_s24  ;;  %s2979_s24 = smov 88  }
  0x69   : > { %v3114_v18 = vpop.permute.xlu2 %612 }
  0x71   : > { %v3127_v22 = vpop.permute.xlu2 %614 }
  0x72   : > { %v3141_v27 = vsel %vm616_vm3, %v3114_v18, %v3127_v22 }
  0x79   : > { %v3153_v32 = vpop.permute.xlu2 %819 }
  0x80   : > { %v3107_v17 = vpop.permute.xlu1 %538 }
  0x81   : > { %v3174_v39 = vpop.permute.xlu2 %954 }
  0x88   : > { %v3116_v19 = vpop.permute.xlu1 %540 }
  0x89   : > { %v407_v10 = vpop.permute.xlu0 %406  ;;  %v3125_v21 = vsel %vm542_vm2, %v3107_v17, %v3116_v19  ;;  %v625_v47 = vpop.permute.xlu2 %624  ;;  %vm1066_vm2 = vcmask 64512  }
  0x8a   : > { %v3088_v11 = vsel %vm410_vm0, 0.0, %v407_v10 }
  0x8b   : > { %430 = vrot.lane.b32.xlu0 %v3088_v11, %s2970_s25  ;;  %v422_v12 = vmul.f32 %v3058_v3, %v3088_v11  ;;  %v547_v26 = vmul.f32 %v3107_v17, %v3088_v11  ;;  %v621_v30 = vmul.f32 %v3114_v18, %v3088_v11  ;;  %v828_v40 = vmul.f32 %v3153_v32, %v3088_v11 }
  0x8d   : > { %2730 = vmatpush.msk.msra.mxu2 %vm442_vm1, %v422_v12 }
  0x8e   : > { %2731 = vmatmul.msk.f32.vlgmr.msra.gmra.mxu2 %vm439_vm7, %v3074_v9 }
  0x90   : > { %v3156_v33 = vpop.permute.xlu1 %747 }
  0x91   : > { %v409_v13 = vpop.permute.xlu0 %408  ;;  %v3201_v49 = vpop.permute.xlu2 %831 }
  0x92   : > { %v3096_v14 = vsel %vm410_vm0, %v407_v10, %v409_v13  ;;  %v416_v15 = vsel %vm410_vm0, %v409_v13, 0.0 }
  0x93   : > { %688 = vrot.lane.b32.xlu0 %v3088_v11, %s2971_s26  ;;  %434 = vrot.lane.b32.xlu2 %v416_v15, %s2970_s25  ;;  %v423_v16 = vmul.f32 %v3065_v6, %v3096_v14  ;;  %v549_v20 = vmul.f32 %v3116_v19, %v416_v15  ;;  %v623_v24 = vmul.f32 %v3127_v22, %v416_v15 }
  0x94   : > { %432 = vrot.lane.b32.xlu1 %v3096_v14, %s2970_s25  ;;  %v548_v25 = vmul.f32 %v3125_v21, %v3096_v14  ;;  %v622_v28 = vmul.f32 %v3141_v27, %v3096_v14  ;;  %v756_v36 = vmul.f32 %v3156_v33, %v416_v15  ;;  %v963_v41 = vmul.f32 %v3174_v39, %v416_v15 }
  0x95   : > { %2732 = vmatpush.msk.msra.mxu3 %vm442_vm1, %v423_v16 }
  0x96   : > { %2733 = vmatmul.msk.f32.vlgmr.msra.gmra.mxu3 %vm439_vm7, %v3074_v9 }
  0x98   : > { %v3180_v43 = vpop.permute.xlu1 %952 }
  0x99   : > { %v3129_v23 = vpop.permute.xlu0 %745  ;;  %v3187_v44 = vsel %vm956_vm6, %v3180_v43, %v3174_v39  ;;  %v961_v46 = vmul.f32 %v3180_v43, %v3088_v11 }
  0x9a   : > { %v754_v29 = vmul.f32 %v3129_v23, %v3088_v11  ;;  %v3164_v35 = vsel %vm749_vm5, %v3129_v23, %v3156_v33  ;;  %v962_v45 = vmul.f32 %v3187_v44, %v3096_v14 }
  0x9b   : > { %692 = vrot.lane.b32.xlu2 %v416_v15, %s2971_s26  ;;  %897 = vrot.lane.b32.xlu0 %v3096_v14, %s2972_s27  ;;  %v755_v38 = vmul.f32 %v3164_v35, %v3096_v14 }
  0x9c   : > { %690 = vrot.lane.b32.xlu1 %v3096_v14, %s2971_s26 }
  0xa0   : > { %v551_v52 = vpop.permute.xlu1 %550 }
  0xa1   : > { %v3149_v31 = vpop.permute.xlu0 %821 }
  0xa2   : > { %v3160_v34 = vsel %vm823_vm4, %v3153_v32, %v3149_v31  ;;  %v830_v42 = vmul.f32 %v3149_v31, %v416_v15 }
  0xa3   : > { %895 = vrot.lane.b32.xlu2 %v3088_v11, %s2972_s27  ;;  %559 = vrot.lane.b32.xlu0 %v549_v20, %s2973_s28  ;;  %v829_v37 = vmul.f32 %v3160_v34, %v3096_v14  ;;  %v1026_v20 = vld [vmem:[%s3555_s3] sm:$0xff] }
  0xa4   : > { %899 = vrot.lane.b32.xlu1 %v416_v15, %s2972_s27 }
  0xa8   : > { %v3205_v55 = vpop.permute.xlu1 %757 }
  0xa9   : > { %v427_v48 = vpop.permute.xlu0 %426 }
  0xab   : > { %633 = vrot.lane.b32.xlu0 %v623_v24, %s2968_s23  ;;  %557 = vrot.lane.b32.xlu2 %v548_v25, %s2973_s28  ;;  %v2977_v24 = vmov 0  }
  0xac   : > { %555 = vrot.lane.b32.xlu1 %v547_v26, %s2973_s28  ;;  %2858 = vset.pattern.permute.xlu2 %v2977_v24 }
  0xad   : > { %2939 = vset.pattern.permute.xlu1 %v2977_v24  ;;  %2940 = vset.pattern.permute.xlu0 %v2977_v24 }
  0xb1   : > { %v687_v50 = vpop.permute.xlu0 %686 }
  0xb3   : > { %631 = vrot.lane.b32.xlu2 %v622_v28, %s2968_s23  ;;  %762 = vrot.lane.b32.xlu0 %v754_v29, %s2974_s30 }
  0xb4   : > { %629 = vrot.lane.b32.xlu1 %v621_v30, %s2968_s23 }
  0xb9   : > { %v3203_v53 = vpop.permute.xlu0 %893 }
  0xbb   : > { %766 = vrot.lane.b32.xlu2 %v756_v36, %s2974_s30  ;;  %838 = vrot.lane.b32.xlu0 %v829_v37, %s2975_s12 }
  0xbc   : > { %764 = vrot.lane.b32.xlu1 %v755_v38, %s2974_s30 }
  0xc3   : > { %836 = vrot.lane.b32.xlu2 %v828_v40, %s2975_s12  ;;  %973 = vrot.lane.b32.xlu0 %v963_v41, %s2976_s13 }
  0xc4   : > { %840 = vrot.lane.b32.xlu1 %v830_v42, %s2975_s12 }
  0xcb   : > { %971 = vrot.lane.b32.xlu2 %v962_v45, %s2976_s13 }
  0xcc   : > { %969 = vrot.lane.b32.xlu1 %v961_v46, %s2976_s13 }
  0xd3   : > { %1029 = vperm.xlu2 %2858, %v1026_v20  }
  0xd4   : > { %964 = vrot.lane.b32.xlu1 %v3074_v9, %s2975_s12 }
  0xed   : > { %v435_v51 = vpop.permute.xlu2 %434 }
  0xf5   : > { %v693_v54 = vpop.permute.xlu2 %692 }
  0xfd   : > { %v431_v56 = vpop.permute.xlu0 %430  ;;  %v896_v57 = vpop.permute.xlu2 %895 }
 0x105   : > { %v689_v58 = vpop.permute.xlu0 %688  ;;  %v558_v63 = vpop.permute.xlu2 %557 }
 0x106   : > { %v433_v59 = vpop.permute.xlu1 %432 }
 0x107   : > { %v437_v60 = vsel %vm436_vm8, %v431_v56, %v433_v59  ;;  %v438_v61 = vsel %vm436_vm8, %v433_v59, %v435_v51 }
 0x108   : > { %2726 = vmatpush.msk.msra.mxu0 %vm442_vm1, %v437_v60  ;;  %2728 = vmatpush.msk.msra.mxu1 %vm442_vm1, %v438_v61 }
 0x109   : > { %2727 = vmatmul.msk.f32.vlgmr.msra.gmra.mxu0 %vm439_vm7, %v427_v48  ;;  %2729 = vmatmul.msk.f32.vlgmr.msra.gmra.mxu1 %vm439_vm7, %v427_v48 }
 0x10d   : > { %v898_v62 = vpop.permute.xlu0 %897  ;;  %v632_v7 = vpop.permute.xlu2 %631 }
 0x10e   : > { %v691_v0 = vpop.permute.xlu1 %690  ;;  %v902_v37 = vsel %vm901_vm14, %v896_v57, %v898_v62 }
 0x10f   : > { %v696_v5 = vsel %vm694_vm10, %v691_v0, %v693_v54  ;;  %v695_v12 = vsel %vm694_vm10, %v689_v58, %v691_v0 }
 0x115   : > { %v560_v1 = vpop.permute.xlu0 %559  ;;  %v767_v13 = vpop.permute.xlu2 %766 }
 0x116   : > { %v900_v2 = vpop.permute.xlu1 %899  ;;  %v563_v4 = vsel %vm561_vm9, %v558_v63, %v560_v1 }
 0x117   : > { %2736 = vmatpush.msk.msrb.mxu1 %vm442_vm1, %v563_v4  ;;  %v903_v38 = vsel %vm901_vm14, %v898_v62, %v900_v2 }
 0x118   : > { %2737 = vmatmul.msk.f32.vlgmr.msrb.gmra.mxu1 %vm439_vm7, %v551_v52 }
 0x119   : > { %2744 = vmatpush.msk.msra.mxu1 %vm442_vm1, %v696_v5  ;;  %v532_v54 = vpop.f32.mrf.mxu3 }
 0x11d   : > { %v634_v8 = vpop.permute.xlu0 %633  ;;  %v837_v25 = vpop.permute.xlu2 %836 }
 0x11e   : > { %v556_v9 = vpop.permute.xlu1 %555  ;;  %v637_v10 = vsel %vm635_vm11, %v632_v7, %v634_v8 }
 0x11f   : > { %v562_v11 = vsel %vm561_vm9, %v556_v9, %v558_v63  ;;  %2740 = vmatpush.msk.msrb.mxu3 %vm442_vm1, %v637_v10 }
 0x120   : > { %2734 = vmatpush.msk.msrb.mxu0 %vm442_vm1, %v562_v11  ;;  %2741 = vmatmul.msk.f32.vlgmr.msrb.gmra.mxu3 %vm439_vm7, %v625_v47 }
 0x121   : > { %2735 = vmatmul.msk.f32.vlgmr.msrb.gmra.mxu0 %vm439_vm7, %v551_v52  ;;  %2745 = vmatmul.msk.f32.vlgmr.msra.gmra.mxu1 %vm439_vm7, %v687_v50  ;;  %v512_v52 = vpop.f32.mrf.mxu2 }
 0x122   : > { %2742 = vmatpush.msk.msra.mxu0 %vm442_vm1, %v695_v12 }
 0x125   : > { %v763_v14 = vpop.permute.xlu0 %762  ;;  %v972_v41 = vpop.permute.xlu2 %971 }
 0x126   : > { %v630_v15 = vpop.permute.xlu1 %629 }
 0x127   : > { %v636_v16 = vsel %vm635_vm11, %v630_v15, %v632_v7 }
 0x128   : > { %2738 = vmatpush.msk.msrb.mxu2 %vm442_vm1, %v636_v16 }
 0x129   : > { %2739 = vmatmul.msk.f32.vlgmr.msrb.gmra.mxu2 %vm439_vm7, %v625_v47  ;;  %2743 = vmatmul.msk.f32.vlgmr.msra.gmra.mxu0 %vm439_vm7, %v687_v50 }
 0x12d   : > { %v839_v26 = vpop.permute.xlu0 %838  ;;  %v1030_v24 = vpop.permute.xlu2 %1029 }
 0x12e   : > { %v765_v28 = vpop.permute.xlu1 %764  ;;  %v843_v29 = vsel %vm842_vm12, %v837_v25, %v839_v26 }
 0x12f   : > { %v769_v30 = vsel %vm768_vm13, %v763_v14, %v765_v28  ;;  %v770_v36 = vsel %vm768_vm13, %v765_v28, %v767_v13  ;;  %2750 = vmatpush.msk.msrb.mxu0 %vm442_vm1, %v843_v29 }
 0x130   : > { %2746 = vmatpush.msk.msra.mxu2 %vm442_vm1, %v769_v30  ;;  %2748 = vmatpush.msk.msra.mxu3 %vm442_vm1, %v770_v36 }
 0x131   : > { %2747 = vmatmul.msk.f32.vlgmr.msra.gmra.mxu2 %vm439_vm7, %v3205_v55  ;;  %2749 = vmatmul.msk.f32.vlgmr.msra.gmra.mxu3 %vm439_vm7, %v3205_v55 }
 0x132   : > { %2751 = vmatmul.msk.f32.vlgmr.msrb.gmra.mxu0 %vm439_vm7, %v3201_v49  ;;  %2754 = vmatpush.msk.msrb.mxu2 %vm442_vm1, %v902_v37 }
 0x133   : > { %2756 = vmatpush.msk.msrb.mxu3 %vm442_vm1, %v903_v38 }
 0x135   : > { %v974_v40 = vpop.permute.xlu0 %973 }
 0x136   : > { %v841_v42 = vpop.permute.xlu1 %840  ;;  %v977_v46 = vsel %vm975_vm15, %v972_v41, %v974_v40  ;;  %v3269_v40 = vld [vmem:[%s3556_s4] sm:$0xff] }
 0x137   : > { %v844_v45 = vsel %vm842_vm12, %v839_v26, %v841_v42 }
 0x138   : > { %2752 = vmatpush.msk.msrb.mxu1 %vm442_vm1, %v844_v45 }
 0x139   : > { %2753 = vmatmul.msk.f32.vlgmr.msrb.gmra.mxu1 %vm439_vm7, %v3201_v49  ;;  %2755 = vmatmul.msk.f32.vlgmr.msrb.gmra.mxu2 %vm439_vm7, %v3203_v53 }
 0x13a   : > { %2757 = vmatmul.msk.f32.vlgmr.msrb.gmra.mxu3 %vm439_vm7, %v3203_v53  ;;  %2760 = vmatpush.msk.msra.mxu1 %vm442_vm1, %v977_v46 }
 0x13e   : > { %v970_v47 = vpop.permute.xlu1 %969 }
 0x13f   : > { %v976_v48 = vsel %vm975_vm15, %v970_v47, %v972_v41 }
 0x140   : > { %2758 = vmatpush.msk.msra.mxu0 %vm442_vm1, %v976_v48 }
 0x146   : > { %v965_v50 = vpop.permute.xlu1 %964 }
 0x147   : > { %2759 = vmatmul.msk.f32.vlgmr.msra.gmra.mxu0 %vm439_vm7, %v965_v50  ;;  %2761 = vmatmul.msk.f32.vlgmr.msra.gmra.mxu1 %vm439_vm7, %v965_v50 }
 0x186   : > { %v464_v51 = vpop.f32.mrf.mxu0  ;;  %v484_v49 = vpop.f32.mrf.mxu1 }
 0x187   : > { %v513_v59 = vadd.f32 %v512_v52, %v464_v51  ;;  %v533_v60 = vadd.f32 %v532_v54, %v484_v49 }
 0x195   : > { %v607_v56 = vpop.f32.mrf.mxu1 }
 0x196   : > { %v611_v62 = vadd.f32 %v607_v56, %v533_v60 }
 0x19e   : > { %v587_v55 = vpop.f32.mrf.mxu0  ;;  %v740_v61 = vpop.f32.mrf.mxu1 }
 0x19f   : > { %v610_v63 = vadd.f32 %v587_v55, %v513_v59 }
 0x1a3   : > { %v681_v53 = vpop.f32.mrf.mxu3 }
 0x1a4   : > { %v685_v2 = vadd.f32 %v681_v53, %v611_v62 }
 0x1a6   : > { %v720_v58 = vpop.f32.mrf.mxu0  ;;  %v744_v7 = vadd.f32 %v740_v61, %v685_v2 }
 0x1ac   : > { %v661_v57 = vpop.f32.mrf.mxu2 }
 0x1ad   : > { %v684_v4 = vadd.f32 %v661_v57, %v610_v63 }
 0x1af   : > { %v743_v5 = vadd.f32 %v720_v58, %v684_v4  ;;  %v868_v8 = vpop.f32.mrf.mxu0 }
 0x1b4   : > { %v794_v0 = vpop.f32.mrf.mxu2  ;;  %v814_v1 = vpop.f32.mrf.mxu3 }
 0x1b5   : > { %v817_v10 = vadd.f32 %v794_v0, %v743_v5  ;;  %v818_v11 = vadd.f32 %v814_v1, %v744_v7 }
 0x1b6   : > { %v888_v9 = vpop.f32.mrf.mxu1 }
 0x1b7   : > { %v892_v14 = vadd.f32 %v888_v9, %v818_v11  ;;  %v891_v15 = vadd.f32 %v868_v8, %v817_v10  ;;  %v1573_v9 = vld [vmem:[%s3557_s5] sm:$0xff] }
 0x1bc   : > { %v927_v12 = vpop.f32.mrf.mxu2 }
 0x1bd   : > { %v947_v13 = vpop.f32.mrf.mxu3  ;;  %v950_v16 = vadd.f32 %v927_v12, %v891_v15 }
 0x1be   : > { %v951_v20 = vadd.f32 %v947_v13, %v892_v14 }
 0x1c4   : > { %v1001_v25 = vpop.f32.mrf.mxu0  ;;  %v1021_v26 = vpop.f32.mrf.mxu1 }
 0x1c5   : > { %v1024_v28 = vadd.f32 %v1001_v25, %v950_v16  ;;  %v1025_v29 = vadd.f32 %v1021_v26, %v951_v20 }
 0x1c7   : > { %v1032_v30 = vadd.f32 %v1030_v24, %v1024_v28  ;;  %v1033_v36 = vadd.f32 %v1030_v24, %v1025_v29 }
 0x1c9   : > { %v1034_v37 = vmax.f32 %v1032_v30, 0.0  ;;  %v1035_v38 = vmax.f32 %v1033_v36, 0.0 }
 0x1cb   : > { %1038 = vrot.lane.b32.xlu0 %v1034_v37, %s2959_s29  ;;  %1040 = vrot.lane.b32.xlu1 %v1035_v38, %s2959_s29 }
 0x1d3   : > { %1052 = vrot.lane.b32.xlu1 %v3269_v40, %s2963_s16 }
 0x1db   : > { %1154 = vrot.lane.b32.xlu1 %v3269_v40, %s2968_s23 }
 0x1e3   : > { %1275 = vrot.lane.b32.xlu1 %v3269_v40, %s2975_s12 }
 0x1eb   : > { %1216 = vrot.lane.b32.xlu1 %v3269_v40, %s2966_s21 }
 0x1f3   : > { %1396 = vrot.lane.b32.xlu1 %v3269_v40, %s2978_s22 }
 0x1fb   : > { %1334 = vrot.lane.b32.xlu1 %v3269_v40, %s2979_s24 }
 0x203   : > { %1514 = vrot.lane.b32.xlu1 %v3269_v40, %s2980_s14 }
 0x20b   : > { %1455 = vrot.lane.b32.xlu1 %v3269_v40, %s2981_s15 }
 0x23d   : > { %v1041_v41 = vpop.permute.xlu1 %1040  ;;  %v1039_v42 = vpop.permute.xlu0 %1038 }
 0x23e   : > { %v1047_v45 = vsel %vm410_vm0, %v1041_v41, 0.0  ;;  %v1042_v46 = vsel %vm410_vm0, %v1039_v42, %v1041_v41  ;;  %v1046_v47 = vsel %vm410_vm0, 0.0, %v1039_v42 }
 0x23f   : > { %1060 = vrot.lane.b32.xlu0 %v1047_v45, %s2970_s25  ;;  %v1048_v48 = vmul.f32 %v1046_v47, %v3058_v3  ;;  %v2859_v50 = vpack.i.bf16 %v1042_v46, %v1046_v47  ;;  %v1049_v51 = vmul.f32 %v1042_v46, %v3065_v6  ;;  %v1151_v49 = vmul.f32 %v1046_v47, %v3107_v17 }
 0x240   : > { %v1152_v52 = vmul.f32 %v1042_v46, %v3125_v21  ;;  %v1153_v54 = vmul.f32 %v1047_v45, %v3116_v19  ;;  %v1213_v56 = vmul.f32 %v1046_v47, %v3114_v18  ;;  %v1214_v57 = vmul.f32 %v1042_v46, %v3141_v27 }
 0x241   : > { %1126 = vmatpush.msrb.mxu0 %v1048_v48  ;;  %2860 = vrot.lane.b32.xlu2 %v2859_v50, %s2970_s25  ;;  %v1215_v53 = vmul.f32 %v1047_v45, %v3127_v22  ;;  %v1393_v59 = vmul.f32 %v1046_v47, %v3153_v32  ;;  %v1394_v60 = vmul.f32 %v1042_v46, %v3160_v34 }
 0x242   : > { %1146 = vmatpush.msrb.mxu1 %v1049_v51  ;;  %v2869_v55 = vpack.i.bf16 %v1152_v52, %v1151_v49  ;;  %v2874_v58 = vpack.i.bf16 %v1214_v57, %v1213_v56  ;;  %v1395_v61 = vmul.f32 %v1047_v45, %v3149_v31  ;;  %v1331_v63 = vmul.f32 %v1046_v47, %v3129_v23 }
 0x243   : > { %v2879_v62 = vpack.i.bf16 %v1394_v60, %v1393_v59  ;;  %v1332_v0 = vmul.f32 %v1042_v46, %v3164_v35  ;;  %v1333_v1 = vmul.f32 %v1047_v45, %v3156_v33  ;;  %v1511_v4 = vmul.f32 %v1046_v47, %v3180_v43  ;;  %2764 = vmatmul.msk.f32.vlgmr.msrb.gmra.mxu0 %vm1066_vm2, %v3269_v40 }
 0x244   : > { %v1512_v5 = vmul.f32 %v1042_v46, %v3187_v44  ;;  %v1513_v7 = vmul.f32 %v1047_v45, %v3174_v39  ;;  %2765 = vmatmul.msk.f32.vlgmr.msrb.gmra.mxu1 %vm1066_vm2, %v3269_v40 }
 0x245   : > { %v2884_v2 = vpack.i.bf16 %v1332_v0, %v1331_v63  ;;  %v1053_v10 = vpop.permute.xlu1 %1052 }
 0x246   : > { %v2889_v8 = vpack.i.bf16 %v1512_v5, %v1511_v4 }
 0x247   : > { %1281 = vrot.lane.b32.xlu0 %v1047_v45, %s2971_s26 }
 0x249   : > { %2865 = vrot.lane.b32.xlu2 %v2859_v50, %s2971_s26 }
 0x24d   : > { %v1155_v11 = vpop.permute.xlu1 %1154 }
 0x24f   : > { %1163 = vrot.lane.b32.xlu0 %v1153_v54, %s2973_s28 }
 0x251   : > { %2870 = vrot.lane.b32.xlu2 %v2869_v55, %s2973_s28 }
 0x255   : > { %v1276_v20 = vpop.permute.xlu1 %1275 }
 0x257   : > { %1225 = vrot.lane.b32.xlu0 %v1215_v53, %s2968_s23 }
 0x259   : > { %2875 = vrot.lane.b32.xlu2 %v2874_v58, %s2968_s23 }
 0x25d   : > { %v1217_v30 = vpop.permute.xlu1 %1216 }
 0x25f   : > { %1405 = vrot.lane.b32.xlu0 %v1395_v61, %s2975_s12 }
 0x261   : > { %2880 = vrot.lane.b32.xlu2 %v2879_v62, %s2975_s12 }
 0x265   : > { %v1397_v47 = vpop.permute.xlu1 %1396 }
 0x267   : > { %1343 = vrot.lane.b32.xlu0 %v1333_v1, %s2974_s30 }
 0x269   : > { %2885 = vrot.lane.b32.xlu2 %v2884_v2, %s2974_s30 }
 0x26d   : > { %v1335_v55 = vpop.permute.xlu1 %1334 }
 0x26f   : > { %1523 = vrot.lane.b32.xlu0 %v1513_v7, %s2976_s13 }
 0x271   : > { %2890 = vrot.lane.b32.xlu2 %v2889_v8, %s2976_s13 }
 0x275   : > { %v1515_v0 = vpop.permute.xlu1 %1514 }
 0x277   : > { %1461 = vrot.lane.b32.xlu0 %v1047_v45, %s2972_s27 }
 0x279   : > { %2895 = vrot.lane.b32.xlu2 %v2859_v50, %s2972_s27 }
 0x281   : > { %1576 = vperm.xlu2 %2858, %v1573_v9  }
 0x29b   : > { %v2861_v12 = vpop.permute.xlu2 %2860 }
 0x29c   : > { %v2863_v13 = vunpack.i.h.bf16 %v2861_v12  ;;  %v2862_v14 = vunpack.i.l.bf16 %v2861_v12 }
 0x29e   : > { %v1062_v15 = vsel %vm436_vm8, %v2862_v14, %v2863_v13 }
 0x29f   : > { %1084 = vmatpush.msra.mxu2 %v1062_v15 }
 0x2a0   : > { %2762 = vmatmul.msk.f32.vlgmr.msra.gmra.mxu2 %vm1066_vm2, %v1053_v10 }
 0x2a3   : > { %v2866_v16 = vpop.permute.xlu2 %2865 }
 0x2a4   : > { %v2868_v25 = vunpack.i.h.bf16 %v2866_v16  ;;  %v2867_v26 = vunpack.i.l.bf16 %v2866_v16 }
 0x2a6   : > { %v1283_v37 = vsel %vm694_vm10, %v2867_v26, %v2868_v25 }
 0x2ab   : > { %v2871_v24 = vpop.permute.xlu2 %2870 }
 0x2ac   : > { %v2873_v28 = vunpack.i.h.bf16 %v2871_v24  ;;  %v2872_v29 = vunpack.i.l.bf16 %v2871_v24 }
 0x2ae   : > { %v1165_v36 = vsel %vm561_vm9, %v2872_v29, %v2873_v28 }
 0x2af   : > { %1186 = vmatpush.msrb.mxu2 %v1165_v36 }
 0x2b0   : > { %2766 = vmatmul.msk.f32.vlgmr.msrb.gmra.mxu2 %vm1066_vm2, %v1155_v11 }
 0x2b1   : > { %1304 = vmatpush.msra.mxu2 %v1283_v37  ;;  %v1061_v38 = vpop.permute.xlu0 %1060 }
 0x2b2   : > { %v1063_v40 = vsel %vm436_vm8, %v2863_v13, %v1061_v38 }
 0x2b3   : > { %v2876_v41 = vpop.permute.xlu2 %2875  ;;  %1104 = vmatpush.msra.mxu3 %v1063_v40 }
 0x2b4   : > { %v2878_v42 = vunpack.i.h.bf16 %v2876_v41  ;;  %v2877_v45 = vunpack.i.l.bf16 %v2876_v41  ;;  %2763 = vmatmul.msk.f32.vlgmr.msra.gmra.mxu3 %vm1066_vm2, %v1053_v10 }
 0x2b6   : > { %v1227_v46 = vsel %vm635_vm11, %v2877_v45, %v2878_v42 }
 0x2b7   : > { %1248 = vmatpush.msra.mxu0 %v1227_v46 }
 0x2b8   : > { %2768 = vmatmul.msk.f32.vlgmr.msra.gmra.mxu0 %vm1066_vm2, %v1217_v30  ;;  %2770 = vmatmul.msk.f32.vlgmr.msra.gmra.mxu2 %vm1066_vm2, %v1276_v20 }
 0x2b9   : > { %v1282_v48 = vpop.permute.xlu0 %1281 }
 0x2ba   : > { %v1284_v53 = vsel %vm694_vm10, %v2868_v25, %v1282_v48 }
 0x2bb   : > { %v2881_v50 = vpop.permute.xlu2 %2880 }
 0x2bc   : > { %v2883_v51 = vunpack.i.h.bf16 %v2881_v50  ;;  %v2882_v49 = vunpack.i.l.bf16 %v2881_v50 }
 0x2be   : > { %v1407_v52 = vsel %vm842_vm12, %v2882_v49, %v2883_v51 }
 0x2bf   : > { %1428 = vmatpush.msrb.mxu2 %v1407_v52 }
 0x2c0   : > { %2774 = vmatmul.msk.f32.vlgmr.msrb.gmra.mxu2 %vm1066_vm2, %v1397_v47 }
 0x2c1   : > { %v1164_v54 = vpop.permute.xlu0 %1163  ;;  %v1148_v48 = vpop.f32.mrf.mxu1 }
 0x2c2   : > { %v1166_v56 = vsel %vm561_vm9, %v2873_v28, %v1164_v54  ;;  %v1128_v28 = vpop.f32.mrf.mxu0 }
 0x2c3   : > { %v2886_v57 = vpop.permute.xlu2 %2885  ;;  %1206 = vmatpush.msrb.mxu3 %v1166_v56 }
 0x2c4   : > { %v2888_v58 = vunpack.i.h.bf16 %v2886_v57  ;;  %v2887_v59 = vunpack.i.l.bf16 %v2886_v57  ;;  %2767 = vmatmul.msk.f32.vlgmr.msrb.gmra.mxu3 %vm1066_vm2, %v1155_v11  ;;  %v1456_v11 = vpop.permute.xlu1 %1455 }
 0x2c5   : > { %1324 = vmatpush.msra.mxu3 %v1284_v53 }
 0x2c6   : > { %v1345_v60 = vsel %vm768_vm13, %v2887_v59, %v2888_v58 }
 0x2c7   : > { %1366 = vmatpush.msrb.mxu0 %v1345_v60 }
 0x2c8   : > { %2772 = vmatmul.msk.f32.vlgmr.msrb.gmra.mxu0 %vm1066_vm2, %v1335_v55 }
 0x2c9   : > { %v1226_v61 = vpop.permute.xlu0 %1225 }
 0x2ca   : > { %v1228_v62 = vsel %vm635_vm11, %v2878_v42, %v1226_v61 }
 0x2cb   : > { %v2891_v63 = vpop.permute.xlu2 %2890  ;;  %1268 = vmatpush.msra.mxu1 %v1228_v62 }
 0x2cc   : > { %v2893_v1 = vunpack.i.h.bf16 %v2891_v63  ;;  %v2892_v2 = vunpack.i.l.bf16 %v2891_v63  ;;  %2769 = vmatmul.msk.f32.vlgmr.msra.gmra.mxu1 %vm1066_vm2, %v1217_v30  ;;  %2771 = vmatmul.msk.f32.vlgmr.msra.gmra.mxu3 %vm1066_vm2, %v1276_v20 }
 0x2ce   : > { %v1525_v4 = vsel %vm975_vm15, %v2892_v2, %v2893_v1 }
 0x2cf   : > { %1546 = vmatpush.msra.mxu2 %v1525_v4 }
 0x2d0   : > { %2778 = vmatmul.msk.f32.vlgmr.msra.gmra.mxu2 %vm1066_vm2, %v1515_v0 }
 0x2d1   : > { %v1406_v5 = vpop.permute.xlu0 %1405 }
 0x2d2   : > { %v1408_v7 = vsel %vm842_vm12, %v2883_v51, %v1406_v5 }
 0x2d3   : > { %v2896_v8 = vpop.permute.xlu2 %2895  ;;  %1448 = vmatpush.msrb.mxu3 %v1408_v7 }
 0x2d4   : > { %v2898_v9 = vunpack.i.h.bf16 %v2896_v8  ;;  %v2897_v10 = vunpack.i.l.bf16 %v2896_v8  ;;  %2775 = vmatmul.msk.f32.vlgmr.msrb.gmra.mxu3 %vm1066_vm2, %v1397_v47 }
 0x2d6   : > { %v1463_v12 = vsel %vm901_vm14, %v2897_v10, %v2898_v9 }
 0x2d7   : > { %1484 = vmatpush.msra.mxu0 %v1463_v12 }
 0x2d8   : > { %2776 = vmatmul.msk.f32.vlgmr.msra.gmra.mxu0 %vm1066_vm2, %v1456_v11 }
 0x2d9   : > { %v1344_v13 = vpop.permute.xlu0 %1343 }
 0x2da   : > { %v1346_v14 = vsel %vm768_vm13, %v2888_v58, %v1344_v13 }
 0x2db   : > { %1386 = vmatpush.msrb.mxu1 %v1346_v14  ;;  %v1577_v54 = vpop.permute.xlu2 %1576 }
 0x2dc   : > { %2773 = vmatmul.msk.f32.vlgmr.msrb.gmra.mxu1 %vm1066_vm2, %v1335_v55 }
 0x2e1   : > { %v1524_v15 = vpop.permute.xlu0 %1523 }
 0x2e2   : > { %v1526_v16 = vsel %vm975_vm15, %v2893_v1, %v1524_v15  ;;  %v1597_v1 = vld [vmem:[%s3558_s6] sm:$0xff] }
 0x2e3   : > { %1566 = vmatpush.msra.mxu3 %v1526_v16 }
 0x2e4   : > { %2779 = vmatmul.msk.f32.vlgmr.msra.gmra.mxu3 %vm1066_vm2, %v1515_v0 }
 0x2e9   : > { %v1462_v20 = vpop.permute.xlu0 %1461 }
 0x2ea   : > { %v1464_v24 = vsel %vm901_vm14, %v2898_v9, %v1462_v20 }
 0x2eb   : > { %1504 = vmatpush.msra.mxu1 %v1464_v24 }
 0x2ec   : > { %2777 = vmatmul.msk.f32.vlgmr.msra.gmra.mxu1 %vm1066_vm2, %v1456_v11 }
 0x323   : > { %v1086_v25 = vpop.f32.mrf.mxu2 }
 0x324   : > { %v1129_v36 = vadd.f32 %v1128_v28, %v1086_v25 }
 0x333   : > { %v1188_v26 = vpop.f32.mrf.mxu2 }
 0x334   : > { %v1211_v38 = vadd.f32 %v1188_v26, %v1129_v36 }
 0x335   : > { %v1250_v29 = vpop.f32.mrf.mxu0 }
 0x336   : > { %v1273_v40 = vadd.f32 %v1250_v29, %v1211_v38 }
 0x337   : > { %v1106_v37 = vpop.f32.mrf.mxu3 }
 0x338   : > { %v1149_v53 = vadd.f32 %v1148_v48, %v1106_v37  ;;  %v3417_v37 = vld [vmem:[%s3560_s8] sm:$0xf] }
 0x33b   : > { %v1306_v30 = vpop.f32.mrf.mxu2 }
 0x33c   : > { %v1329_v45 = vadd.f32 %v1306_v30, %v1273_v40 }
 0x343   : > { %v1430_v42 = vpop.f32.mrf.mxu2 }
 0x345   : > { %v1368_v41 = vpop.f32.mrf.mxu0 }
 0x346   : > { %v1391_v47 = vadd.f32 %v1368_v41, %v1329_v45 }
 0x347   : > { %v1208_v46 = vpop.f32.mrf.mxu3 }
 0x348   : > { %v1453_v50 = vadd.f32 %v1430_v42, %v1391_v47  ;;  %v1212_v59 = vadd.f32 %v1208_v46, %v1149_v53 }
 0x349   : > { %v1270_v56 = vpop.f32.mrf.mxu1 }
 0x34a   : > { %v1274_v61 = vadd.f32 %v1270_v56, %v1212_v59 }
 0x34f   : > { %v1326_v57 = vpop.f32.mrf.mxu3 }
 0x350   : > { %v1330_v63 = vadd.f32 %v1326_v57, %v1274_v61 }
 0x353   : > { %v1548_v49 = vpop.f32.mrf.mxu2 }
 0x355   : > { %v1486_v51 = vpop.f32.mrf.mxu0 }
 0x356   : > { %v1509_v52 = vadd.f32 %v1486_v51, %v1453_v50 }
 0x357   : > { %v1450_v0 = vpop.f32.mrf.mxu3 }
 0x358   : > { %v1571_v55 = vadd.f32 %v1548_v49, %v1509_v52 }
 0x359   : > { %v1388_v62 = vpop.f32.mrf.mxu1 }
 0x35a   : > { %v1579_v58 = vadd.f32 %v1577_v54, %v1571_v55  ;;  %v1392_v2 = vadd.f32 %v1388_v62, %v1330_v63 }
 0x35c   : > { %v3362_v60 = vmax.f32 %v1579_v58, 0.0  ;;  %v1454_v4 = vadd.f32 %v1450_v0, %v1392_v2 }
 0x35e   : > { %1585 = vrot.lane.b32.xlu0 %v3362_v60, %s2959_s29 }
 0x366   : > { %1599 = vrot.lane.b32.xlu0 %v1597_v1, %s2963_s16 }
 0x367   : > { %v1568_v8 = vpop.f32.mrf.mxu3 }
 0x369   : > { %v1506_v5 = vpop.f32.mrf.mxu1 }
 0x36a   : > { %v1510_v7 = vadd.f32 %v1506_v5, %v1454_v4 }
 0x36c   : > { %v1572_v9 = vadd.f32 %v1568_v8, %v1510_v7 }
 0x36e   : > { %v1580_v10 = vadd.f32 %v1577_v54, %v1572_v9  ;;  %1762 = vrot.lane.b32.xlu0 %v1597_v1, %s2966_s21 }
 0x370   : > { %v3371_v11 = vmax.f32 %v1580_v10, 0.0 }
 0x372   : > { %1587 = vrot.lane.b32.xlu1 %v3371_v11, %s2959_s29 }
 0x376   : > { %1700 = vrot.lane.b32.xlu0 %v1597_v1, %s2968_s23 }
 0x37e   : > { %1880 = vrot.lane.b32.xlu0 %v1597_v1, %s2979_s24 }
 0x386   : > { %1821 = vrot.lane.b32.xlu0 %v1597_v1, %s2975_s12 }
 0x38e   : > { %2001 = vrot.lane.b32.xlu0 %v1597_v1, %s2981_s15 }
 0x396   : > { %1942 = vrot.lane.b32.xlu0 %v1597_v1, %s2978_s22 }
 0x3d0   : > { %v1586_v12 = vpop.permute.xlu0 %1585 }
 0x3d1   : > { %v1593_v13 = vsel %vm410_vm0, 0.0, %v1586_v12 }
 0x3d2   : > { %1603 = vrot.lane.b32.xlu1 %v1593_v13, %s2970_s25  ;;  %v1595_v14 = vmul.f32 %v1593_v13, %v3058_v3  ;;  %v1759_v15 = vmul.f32 %v1593_v13, %v3114_v18  ;;  %v1697_v29 = vmul.f32 %v1593_v13, %v3107_v17  ;;  %v2337_v17 = vld [vmem:[%s3560_s8] sm:$0xf]  ;;  %v1939_v36 = vmul.f32 %v1593_v13, %v3153_v32 }
 0x3d4   : > { %1672 = vmatpush.msrb.mxu2 %v1595_v14 }
 0x3d5   : > { %2782 = vmatmul.msk.f32.vlgmr.msrb.gmra.mxu2 %vm1066_vm2, %v1597_v1 }
 0x3d8   : > { %v1600_v45 = vpop.permute.xlu0 %1599 }
 0x3da   : > { %1823 = vrot.lane.b32.xlu1 %v1593_v13, %s2971_s26 }
 0x3e2   : > { %1767 = vrot.lane.b32.xlu1 %v1759_v15, %s2968_s23 }
 0x3e4   : > { %v1588_v16 = vpop.permute.xlu1 %1587 }
 0x3e5   : > { %v1589_v20 = vsel %vm410_vm0, %v1586_v12, %v1588_v16  ;;  %v1594_v24 = vsel %vm410_vm0, %v1588_v16, 0.0 }
 0x3e6   : > { %v2899_v25 = vpack.i.bf16 %v1594_v24, %v1589_v20  ;;  %v1596_v26 = vmul.f32 %v1589_v20, %v3065_v6  ;;  %v2058_v28 = vmul.f32 %v1589_v20, %v3187_v44  ;;  %v2059_v3 = vmul.f32 %v1594_v24, %v3174_v39  ;;  %v2236_v39 = vld [vmem:[%s3560_s8] sm:$0xf] }
 0x3e7   : > { %v1877_v6 = vmul.f32 %v1593_v13, %v3129_v23  ;;  %v1760_v44 = vmul.f32 %v1589_v20, %v3141_v27  ;;  %v1761_v23 = vmul.f32 %v1594_v24, %v3127_v22  ;;  %v1698_v38 = vmul.f32 %v1589_v20, %v3125_v21 }
 0x3e8   : > { %2900 = vrot.lane.b32.xlu2 %v2899_v25, %s2970_s25  ;;  %1692 = vmatpush.msrb.mxu3 %v1596_v26  ;;  %v2934_v18 = vpack.i.bf16 %v2059_v3, %v2058_v28  ;;  %v1699_v27 = vmul.f32 %v1594_v24, %v3116_v19  ;;  %v1878_v32 = vmul.f32 %v1589_v20, %v3164_v35  ;;  %v2177_v35 = vld [vmem:[%s3560_s8] sm:$0xf] }
 0x3e9   : > { %2783 = vmatmul.msk.f32.vlgmr.msrb.gmra.mxu3 %vm1066_vm2, %v1597_v1  ;;  %v2914_v30 = vpack.i.bf16 %v1761_v23, %v1760_v44  ;;  %v1879_v40 = vmul.f32 %v1594_v24, %v3156_v33  ;;  %v1940_v21 = vmul.f32 %v1589_v20, %v3160_v34  ;;  %v1941_v19 = vmul.f32 %v1594_v24, %v3149_v31  ;;  %v1763_v31 = vpop.permute.xlu0 %1762  ;;  %v2176_v34 = vld [vmem:[%s3561_s9] sm:$0xf] }
 0x3ea   : > { %1705 = vrot.lane.b32.xlu1 %v1697_v29, %s2973_s28  ;;  %2935 = vrot.lane.b32.xlu0 %v2934_v18, %s2976_s13  ;;  %v2919_v22 = vpack.i.bf16 %v1699_v27, %v1698_v38  ;;  %v2057_v33 = vmul.f32 %v1593_v13, %v3180_v43  ;;  %v2119_v20 = vld [vmem:[%s3559_s7] sm:$0xff] }
 0x3eb   : > { %v2924_v41 = vpack.i.bf16 %v1879_v40, %v1878_v32  ;;  %v2929_v42 = vpack.i.bf16 %v1941_v19, %v1940_v21 }
 0x3f0   : > { %2905 = vrot.lane.b32.xlu2 %v2899_v25, %s2971_s26 }
 0x3f1   : > { %v1701_v46 = vpop.permute.xlu0 %1700 }
 0x3f2   : > { %1885 = vrot.lane.b32.xlu1 %v1877_v6, %s2974_s30  ;;  %2282 = vrot.lane.b32.xlu0 %v2236_v39, %s2979_s24 }
 0x3f8   : > { %2910 = vrot.lane.b32.xlu2 %v2899_v25, %s2972_s27 }
 0x3f9   : > { %v1881_v52 = vpop.permute.xlu0 %1880 }
 0x3fa   : > { %2003 = vrot.lane.b32.xlu1 %v1593_v13, %s2972_s27  ;;  %2339 = vrot.lane.b32.xlu0 %v2337_v17, %s2963_s16 }
 0x400   : > { %2915 = vrot.lane.b32.xlu2 %v2914_v30, %s2968_s23 }
 0x401   : > { %v1822_v57 = vpop.permute.xlu0 %1821 }
 0x402   : > { %1947 = vrot.lane.b32.xlu1 %v1939_v36, %s2975_s12  ;;  %2528 = vrot.lane.b32.xlu0 %v3417_v37, %s2968_s23 }
 0x408   : > { %2920 = vrot.lane.b32.xlu2 %v2919_v22, %s2973_s28 }
 0x409   : > { %v2002_v63 = vpop.permute.xlu0 %2001 }
 0x40a   : > { %2060 = vrot.lane.b32.xlu1 %v1597_v1, %s2980_s14 }
 0x410   : > { %2925 = vrot.lane.b32.xlu2 %v2924_v41, %s2974_s30 }
 0x411   : > { %v1943_v14 = vpop.permute.xlu0 %1942 }
 0x412   : > { %2238 = vrot.lane.b32.xlu1 %v2236_v39, %s2966_s21 }
 0x418   : > { %2930 = vrot.lane.b32.xlu2 %v2929_v42, %s2975_s12 }
 0x41a   : > { %2484 = vrot.lane.b32.xlu1 %v3417_v37, %s2980_s14 }
 0x420   : > { %2184 = vrot.lane.b32.xlu2 %v2177_v35, %s2975_s12  ;;  %s2824_s12 = sshll.u32 %s3567_s18, 5 }
 0x421   : > { %s3523_s14 = scalar_lea.vmem %s3563_s11, %s2824_s12 }
 0x422   : > { %2122 = vperm.xlu1 %2939, %v2119_v20  }
 0x428   : > { %2065 = vrot.lane.b32.xlu2 %v2057_v33, %s2976_s13 }
 0x430   : > { %2383 = vrot.lane.b32.xlu2 %v2337_v17, %s2981_s15  ;;  %s2722_s15 = sshll.u32 %s3567_s18, 1 }
 0x431   : > { %s392_s25 = scalar_lea.vmem %s3562_s10, %s2722_s15 }
 0x438   : > { %2440 = vrot.lane.b32.xlu2 %v3417_v37, %s2978_s22 }
 0x440   : > { %2180 = vperm.xlu2 %2858, %v2176_v34  }
 0x442   : > { %v2901_v47 = vpop.permute.xlu2 %2900 }
 0x443   : > { %v2903_v48 = vunpack.i.h.bf16 %v2901_v47  ;;  %v2902_v50 = vunpack.i.l.bf16 %v2901_v47 }
 0x444   : > { %v1604_v51 = vpop.permute.xlu1 %1603 }
 0x445   : > { %v1609_v43 = vsel %vm436_vm8, %v1604_v51, %v2902_v50  ;;  %v1610_v49 = vsel %vm436_vm8, %v2902_v50, %v2903_v48 }
 0x446   : > { %1630 = vmatpush.msrb.mxu0 %v1609_v43  ;;  %1650 = vmatpush.msrb.mxu1 %v1610_v49 }
 0x447   : > { %2780 = vmatmul.msk.f32.vlgmr.msrb.gmra.mxu0 %vm1066_vm2, %v1600_v45  ;;  %2781 = vmatmul.msk.f32.vlgmr.msrb.gmra.mxu1 %vm1066_vm2, %v1600_v45 }
 0x44a   : > { %v2906_v54 = vpop.permute.xlu2 %2905 }
 0x44b   : > { %v2908_v4 = vunpack.i.h.bf16 %v2906_v54  ;;  %v2907_v5 = vunpack.i.l.bf16 %v2906_v54 }
 0x44c   : > { %v1824_v55 = vpop.permute.xlu1 %1823 }
 0x44d   : > { %v1829_v13 = vsel %vm694_vm10, %v1824_v55, %v2907_v5  ;;  %v1830_v15 = vsel %vm694_vm10, %v2907_v5, %v2908_v4 }
 0x452   : > { %v2911_v56 = vpop.permute.xlu2 %2910 }
 0x453   : > { %v2913_v26 = vunpack.i.h.bf16 %v2911_v56  ;;  %v2912_v28 = vunpack.i.l.bf16 %v2911_v56 }
 0x454   : > { %v1768_v53 = vpop.permute.xlu1 %1767 }
 0x455   : > { %v2010_v39 = vsel %vm901_vm14, %v2912_v28, %v2913_v26 }
 0x458   : > { %v1674_v48 = vpop.f32.mrf.mxu2 }
 0x45a   : > { %v2916_v58 = vpop.permute.xlu2 %2915 }
 0x45b   : > { %v2918_v59 = vunpack.i.h.bf16 %v2916_v58  ;;  %v2917_v61 = vunpack.i.l.bf16 %v2916_v58 }
 0x45c   : > { %v1706_v62 = vpop.permute.xlu1 %1705  ;;  %v2936_v17 = vpop.permute.xlu0 %2935 }
 0x45d   : > { %v1773_v0 = vsel %vm635_vm11, %v1768_v53, %v2917_v61  ;;  %v1774_v1 = vsel %vm635_vm11, %v2917_v61, %v2918_v59  ;;  %v2938_v36 = vunpack.i.h.bf16 %v2936_v17  ;;  %v2937_v38 = vunpack.i.l.bf16 %v2936_v17 }
 0x45e   : > { %1794 = vmatpush.msra.mxu2 %v1773_v0  ;;  %1814 = vmatpush.msra.mxu3 %v1774_v1 }
 0x45f   : > { %2786 = vmatmul.msk.f32.vlgmr.msra.gmra.mxu2 %vm1066_vm2, %v1763_v31  ;;  %2787 = vmatmul.msk.f32.vlgmr.msra.gmra.mxu3 %vm1066_vm2, %v1763_v31  ;;  %v2072_v40 = vsel %vm975_vm15, %v2937_v38, %v2938_v36 }
 0x462   : > { %v2921_v2 = vpop.permute.xlu2 %2920 }
 0x463   : > { %v2923_v7 = vunpack.i.h.bf16 %v2921_v2  ;;  %v2922_v8 = vunpack.i.l.bf16 %v2921_v2 }
 0x464   : > { %v1886_v9 = vpop.permute.xlu1 %1885  ;;  %v2283_v42 = vpop.permute.xlu0 %2282 }
 0x465   : > { %v1711_v10 = vsel %vm561_vm9, %v1706_v62, %v2922_v8  ;;  %v1712_v12 = vsel %vm561_vm9, %v2922_v8, %v2923_v7  ;;  %vm2168_vm9 = vcmask 1040384  }
 0x466   : > { %1732 = vmatpush.msra.mxu0 %v1711_v10  ;;  %1752 = vmatpush.msra.mxu1 %v1712_v12 }
 0x467   : > { %2784 = vmatmul.msk.f32.vlgmr.msra.gmra.mxu0 %vm1066_vm2, %v1701_v46  ;;  %2785 = vmatmul.msk.f32.vlgmr.msra.gmra.mxu1 %vm1066_vm2, %v1701_v46 }
 0x468   : > { %1850 = vmatpush.msrb.mxu0 %v1829_v13  ;;  %1870 = vmatpush.msrb.mxu1 %v1830_v15 }
 0x46a   : > { %v2926_v16 = vpop.permute.xlu2 %2925 }
 0x46b   : > { %v2928_v24 = vunpack.i.h.bf16 %v2926_v16  ;;  %v2927_v25 = vunpack.i.l.bf16 %v2926_v16 }
 0x46c   : > { %v2004_v3 = vpop.permute.xlu1 %2003  ;;  %v2340_v31 = vpop.permute.xlu0 %2339 }
 0x46d   : > { %v1891_v29 = vsel %vm768_vm13, %v1886_v9, %v2927_v25  ;;  %v1892_v18 = vsel %vm768_vm13, %v2927_v25, %v2928_v24  ;;  %v3467_v6 = vsel %vm901_vm14, %v2004_v3, %v2912_v28  ;;  %v1694_v50 = vpop.f32.mrf.mxu3 }
 0x46e   : > { %1912 = vmatpush.msrb.mxu2 %v1891_v29  ;;  %1932 = vmatpush.msrb.mxu3 %v1892_v18 }
 0x46f   : > { %2788 = vmatmul.msk.f32.vlgmr.msrb.gmra.mxu0 %vm1066_vm2, %v1822_v57  ;;  %2789 = vmatmul.msk.f32.vlgmr.msrb.gmra.mxu1 %vm1066_vm2, %v1822_v57 }
 0x470   : > { %2790 = vmatmul.msk.f32.vlgmr.msrb.gmra.mxu2 %vm1066_vm2, %v1881_v52  ;;  %2791 = vmatmul.msk.f32.vlgmr.msrb.gmra.mxu3 %vm1066_vm2, %v1881_v52 }
 0x471   : > { %2030 = vmatpush.msra.mxu2 %v3467_v6  ;;  %2050 = vmatpush.msra.mxu3 %v2010_v39 }
 0x472   : > { %v2931_v44 = vpop.permute.xlu2 %2930 }
 0x473   : > { %2203 = vmatpush.msrb.mxu2 %v3362_v60  ;;  %2223 = vmatpush.msrb.mxu3 %v3371_v11  ;;  %v2933_v23 = vunpack.i.h.bf16 %v2931_v44  ;;  %v2932_v30 = vunpack.i.l.bf16 %v2931_v44 }
 0x474   : > { %v1948_v27 = vpop.permute.xlu1 %1947 }
 0x475   : > { %v1953_v22 = vsel %vm842_vm12, %v1948_v27, %v2932_v30  ;;  %v1954_v32 = vsel %vm842_vm12, %v2932_v30, %v2933_v23 }
 0x476   : > { %1974 = vmatpush.msra.mxu0 %v1953_v22  ;;  %1994 = vmatpush.msra.mxu1 %v1954_v32 }
 0x477   : > { %2792 = vmatmul.msk.f32.vlgmr.msra.gmra.mxu0 %vm1066_vm2, %v1943_v14  ;;  %2793 = vmatmul.msk.f32.vlgmr.msra.gmra.mxu1 %vm1066_vm2, %v1943_v14 }
 0x478   : > { %2794 = vmatmul.msk.f32.vlgmr.msra.gmra.mxu2 %vm1066_vm2, %v2002_v63  ;;  %2795 = vmatmul.msk.f32.vlgmr.msra.gmra.mxu3 %vm1066_vm2, %v2002_v63 }
 0x479   : > { %2112 = vmatpush.msrb.mxu1 %v2072_v40  ;;  %2301 = vmatpush.msra.mxu2 %v3362_v60 }
 0x47a   : > { %2321 = vmatpush.msra.mxu3 %v3371_v11  ;;  %v2185_v41 = vpop.permute.xlu2 %2184 }
 0x47b   : > { %2277 = vmatpush.msra.mxu1 %v1892_v18 }
 0x47c   : > { %v2061_v21 = vpop.permute.xlu1 %2060 }
 0x47f   : > { %2797 = vmatmul.msk.f32.vlgmr.msrb.gmra.mxu1 %vm1066_vm2, %v2061_v21 }
 0x480   : > { %2800 = vmatmul.msk.f32.vlgmr.msrb.gmra.mxu2 %vm1066_vm2, %v2185_v41  ;;  %2801 = vmatmul.msk.f32.vlgmr.msrb.gmra.mxu3 %vm1066_vm2, %v2185_v41 }
 0x481   : > { %2378 = vmatpush.msrb.mxu1 %v2010_v39  ;;  %2402 = vmatpush.msrb.mxu2 %v3362_v60 }
 0x482   : > { %2422 = vmatpush.msrb.mxu3 %v3371_v11  ;;  %v2066_v19 = vpop.permute.xlu2 %2065 }
 0x483   : > { %v2071_v35 = vsel %vm975_vm15, %v2066_v19, %v2937_v38 }
 0x484   : > { %2092 = vmatpush.msrb.mxu0 %v2071_v35  ;;  %v2239_v33 = vpop.permute.xlu1 %2238 }
 0x485   : > { %2796 = vmatmul.msk.f32.vlgmr.msrb.gmra.mxu0 %vm1066_vm2, %v2061_v21 }
 0x486   : > { %2257 = vmatpush.msra.mxu0 %v1891_v29 }
 0x487   : > { %2803 = vmatmul.msk.f32.vlgmr.msra.gmra.mxu1 %vm1066_vm2, %v2239_v33 }
 0x488   : > { %2358 = vmatpush.msrb.mxu0 %v3467_v6  ;;  %2804 = vmatmul.msk.f32.vlgmr.msra.gmra.mxu2 %vm1066_vm2, %v2283_v42 }
 0x489   : > { %2805 = vmatmul.msk.f32.vlgmr.msra.gmra.mxu3 %vm1066_vm2, %v2283_v42  ;;  %2479 = vmatpush.msra.mxu1 %v1892_v18 }
 0x48a   : > { %2503 = vmatpush.msra.mxu2 %v3362_v60  ;;  %2523 = vmatpush.msra.mxu3 %v3371_v11  ;;  %v2384_v45 = vpop.permute.xlu2 %2383  ;;  %v2529_v11 = vpop.permute.xlu0 %2528 }
 0x48c   : > { %v2485_v34 = vpop.permute.xlu1 %2484 }
 0x48d   : > { %2802 = vmatmul.msk.f32.vlgmr.msra.gmra.mxu0 %vm1066_vm2, %v2239_v33 }
 0x48e   : > { %2459 = vmatpush.msra.mxu0 %v1891_v29 }
 0x48f   : > { %2808 = vmatmul.msk.f32.vlgmr.msrb.gmra.mxu1 %vm1066_vm2, %v2340_v31 }
 0x490   : > { %2809 = vmatmul.msk.f32.vlgmr.msrb.gmra.mxu2 %vm1066_vm2, %v2384_v45  ;;  %2567 = vmatpush.msrb.mxu1 %v2010_v39 }
 0x491   : > { %2810 = vmatmul.msk.f32.vlgmr.msrb.gmra.mxu3 %vm1066_vm2, %v2384_v45  ;;  %2591 = vmatpush.msrb.mxu2 %v2071_v35 }
 0x492   : > { %2611 = vmatpush.msrb.mxu3 %v2072_v40  ;;  %v2441_v60 = vpop.permute.xlu2 %2440 }
 0x494   : > { %v2123_v13 = vpop.permute.xlu1 %2122 }
 0x495   : > { %2807 = vmatmul.msk.f32.vlgmr.msrb.gmra.mxu0 %vm1066_vm2, %v2340_v31 }
 0x496   : > { %2547 = vmatpush.msrb.mxu0 %v3467_v6 }
 0x497   : > { %2813 = vmatmul.msk.f32.vlgmr.msra.gmra.mxu1 %vm1066_vm2, %v2441_v60 }
 0x498   : > { %2814 = vmatmul.msk.f32.vlgmr.msra.gmra.mxu2 %vm1066_vm2, %v2485_v34 }
 0x499   : > { %2815 = vmatmul.msk.f32.vlgmr.msra.gmra.mxu3 %vm1066_vm2, %v2485_v34 }
 0x49a   : > { %v3515_v24 = vpop.permute.xlu2 %2180 }
 0x49d   : > { %2812 = vmatmul.msk.f32.vlgmr.msra.gmra.mxu0 %vm1066_vm2, %v2441_v60 }
 0x49f   : > { %2817 = vmatmul.msk.f32.vlgmr.msrb.gmra.mxu1 %vm1066_vm2, %v2529_v11 }
 0x4a0   : > { %2818 = vmatmul.msk.f32.vlgmr.msrb.gmra.mxu2 %vm1066_vm2, %v3417_v37 }
 0x4a1   : > { %2819 = vmatmul.msk.f32.vlgmr.msrb.gmra.mxu3 %vm1066_vm2, %v3417_v37 }
 0x4a5   : > { %2816 = vmatmul.msk.f32.vlgmr.msrb.gmra.mxu0 %vm1066_vm2, %v2529_v11 }
 0x4c4   : > { %v1652_v46 = vpop.f32.mrf.mxu1  ;;  %v1632_v47 = vpop.f32.mrf.mxu0 }
 0x4c5   : > { %v1695_v54 = vadd.f32 %v1694_v50, %v1652_v46  ;;  %v1675_v53 = vadd.f32 %v1674_v48, %v1632_v47 }
 0x4e2   : > { %v1796_v49 = vpop.f32.mrf.mxu2  ;;  %v1816_v52 = vpop.f32.mrf.mxu3 }
 0x4e4   : > { %v1754_v51 = vpop.f32.mrf.mxu1  ;;  %v1734_v43 = vpop.f32.mrf.mxu0 }
 0x4e5   : > { %v1758_v56 = vadd.f32 %v1754_v51, %v1695_v54  ;;  %v1757_v59 = vadd.f32 %v1734_v43, %v1675_v53 }
 0x4e7   : > { %v1820_v58 = vadd.f32 %v1816_v52, %v1758_v56  ;;  %v1819_v1 = vadd.f32 %v1796_v49, %v1757_v59 }
 0x4ec   : > { %v1872_v55 = vpop.f32.mrf.mxu1  ;;  %v1852_v57 = vpop.f32.mrf.mxu0 }
 0x4ed   : > { %v1876_v37 = vadd.f32 %v1872_v55, %v1820_v58  ;;  %v1875_v2 = vadd.f32 %v1852_v57, %v1819_v1 }
 0x4f3   : > { %v1914_v61 = vpop.f32.mrf.mxu2  ;;  %v1934_v62 = vpop.f32.mrf.mxu3 }
 0x4f4   : > { %v1996_v63 = vpop.f32.mrf.mxu1  ;;  %v1938_v0 = vadd.f32 %v1934_v62, %v1876_v37  ;;  %v1976_v4 = vpop.f32.mrf.mxu0  ;;  %v1937_v7 = vadd.f32 %v1914_v61, %v1875_v2 }
 0x4f6   : > { %v2000_v5 = vadd.f32 %v1996_v63, %v1938_v0  ;;  %v1999_v15 = vadd.f32 %v1976_v4, %v1937_v7  ;;  %v2171_v4 = vlaneseq }
 0x4f8   : > { %vm2173_vm10 = vcmp.lt.s32.totalorder %v2171_v4, 256 }
 0x4fb   : > { %v2032_v8 = vpop.f32.mrf.mxu2  ;;  %v2052_v9 = vpop.f32.mrf.mxu3 }
 0x4fc   : > { %v2056_v10 = vadd.f32 %v2052_v9, %v2000_v5  ;;  %v2114_v12 = vpop.f32.mrf.mxu1  ;;  %v2055_v20 = vadd.f32 %v2032_v8, %v1999_v15 }
 0x4fe   : > { %v2118_v14 = vadd.f32 %v2114_v12, %v2056_v10 }
 0x500   : > { %v2126_v16 = vadd.f32 %v2123_v13, %v2118_v14 }
 0x502   : > { %v2799_v25 = vmul.f32 -1.442695, %v2126_v16  ;;  %v2094_v26 = vpop.f32.mrf.mxu0 }
 0x503   : > { %v2117_v28 = vadd.f32 %v2094_v26, %v2055_v20  ;;  %v2205_v3 = vpop.f32.mrf.mxu2  ;;  %v2225_v29 = vpop.f32.mrf.mxu3 }
 0x504   : > { %2941 = vpow2.f32 %v2799_v25  ;;  %v2206_v18 = vadd.f32 %v2205_v3, %v3515_v24  ;;  %v2226_v6 = vadd.f32 %v2225_v29, %v3515_v24  ;;  %v2279_v39 = vpop.f32.mrf.mxu1 }
 0x505   : > { %v2125_v17 = vadd.f32 %v2123_v13, %v2117_v28 }
 0x506   : > { %v2229_v44 = vmax.f32 %v2226_v6, 0.0  ;;  %v2228_v30 = vmax.f32 %v2206_v18, 0.0 }
 0x507   : > { %v2798_v23 = vmul.f32 -1.442695, %v2125_v17 }
 0x508   : > { %v2232_v36 = vrot.slane %v2229_v44, 4 }
 0x509   : > { %2943 = vpow2.f32 %v2798_v23 }
 0x50a   : > { %v2942_v38 = vpop.eup %2941  ;;  %v2233_v27 = vsel %vm442_vm1, %v2228_v30, %v2232_v36  ;;  %v2259_v22 = vpop.f32.mrf.mxu0 }
 0x50b   : > { %v2134_v32 = vadd.f32 1.0, %v2942_v38  ;;  %2235 = vst [vmem:[%s3523_s14] sm:$0xff] %v2233_v27  ;;  %v2303_v40 = vpop.f32.mrf.mxu2 }
 0x50c   : > { %v2323_v41 = vpop.f32.mrf.mxu3  ;;  %v2304_v21 = vadd.f32 %v2303_v40, %v2259_v22  ;;  %v2380_v42 = vpop.f32.mrf.mxu1 }
 0x50d   : > { %v2324_v19 = vadd.f32 %v2323_v41, %v2279_v39  ;;  %2945 = vrcp.f32 %v2134_v32  ;;  %v2159_v59 = vand.u32 2147483647, %v2134_v32  ;;  %v2161_v61 = vand.u32 2147483648, %v2134_v32 }
 0x50e   : > { %v2326_v45 = vadd.f32 %v2304_v21, %v3515_v24  ;;  %vm2155_vm3 = vweird.f32 %v2134_v32 }
 0x50f   : > { %v2327_v35 = vadd.f32 %v2324_v19, %v3515_v24  ;;  %v2944_v33 = vpop.eup %2943  ;;  %vm2160_vm5 = vcmp.eq.f32.partialorder %v2159_v59, 8.507059e+37  ;;  %v2162_v12 = vor.u32 1.1754944e-38, %v2161_v61 }
 0x510   : > { %v2133_v31 = vadd.f32 1.0, %v2944_v33  ;;  %v2328_v46 = vmax.f32 %v2326_v45, 0.0 }
 0x511   : > { %v2329_v34 = vmax.f32 %v2327_v35, 0.0 }
 0x512   : > { %2947 = vrcp.f32 %v2133_v31  ;;  %v2360_v60 = vpop.f32.mrf.mxu0  ;;  %v2146_v13 = vand.u32 2147483648, %v2133_v31  ;;  %v2144_v15 = vand.u32 2147483647, %v2133_v31  ;;  %vm2140_vm7 = vweird.f32 %v2133_v31 }
 0x513   : > { %v2946_v11 = vpop.eup %2945  ;;  %v2332_v47 = vrot.slane %v2329_v34, 4  ;;  %v2404_v48 = vpop.f32.mrf.mxu2 }
 0x514   : > { %v2424_v50 = vpop.f32.mrf.mxu3  ;;  %v2151_v51 = vmul.f32 %v2946_v11, %v2134_v32  ;;  %v2405_v49 = vadd.f32 %v2404_v48, %v2360_v60  ;;  %v2481_v54 = vpop.f32.mrf.mxu1  ;;  %vm2156_vm0 = vweird.f32 %v2946_v11  ;;  %v2147_v3 = vor.u32 1.1754944e-38, %v2146_v13 }
 0x515   : > { %v2333_v43 = vsel %vm442_vm1, %v2328_v46, %v2332_v47  ;;  %v2425_v52 = vadd.f32 %v2424_v50, %v2380_v42  ;;  %vm3533_vm4 = vmor %vm2155_vm3, %vm2156_vm0  ;;  %vm2145_vm11 = vcmp.eq.f32.partialorder %v2144_v15, 8.507059e+37 }
 0x516   : > { %v2152_v55 = vsub.f32 1.0, %v2151_v51  ;;  %2806 = vst [vmem:[%s3523_s14 + $0x8] sm:$0xff] %v2333_v43  ;;  %v2427_v56 = vadd.f32 %v2405_v49, %v3515_v24 }
 0x517   : > { %v2428_v57 = vadd.f32 %v2425_v52, %v3515_v24 }
 0x518   : > { %v2948_v53 = vpop.eup %2947  ;;  %v2153_v58 = vmul.f32 %v2946_v11, %v2152_v55  ;;  %v2429_v5 = vmax.f32 %v2427_v56, 0.0 }
 0x519   : > { %v2136_v62 = vmul.f32 %v2948_v53, %v2133_v31  ;;  %v2430_v37 = vmax.f32 %v2428_v57, 0.0  ;;  %vm2141_vm6 = vweird.f32 %v2948_v53 }
 0x51a   : > { %v2154_v63 = vadd.f32 %v2946_v11, %v2153_v58  ;;  %v2461_v0 = vpop.f32.mrf.mxu0  ;;  %vm2142_vm8 = vmor %vm2140_vm7, %vm2141_vm6 }
 0x51b   : > { %v2137_v2 = vsub.f32 1.0, %v2136_v62  ;;  %v2433_v7 = vrot.slane %v2430_v37, 4  ;;  %v2505_v9 = vpop.f32.mrf.mxu2 }
 0x51c   : > { %v2525_v8 = vpop.f32.mrf.mxu3  ;;  %v2158_v10 = vsel %vm3533_vm4, %v2946_v11, %v2154_v63  ;;  %v2569_v28 = vpop.f32.mrf.mxu1  ;;  %v2506_v6 = vadd.f32 %v2505_v9, %v2461_v0 }
 0x51d   : > { %v2138_v14 = vmul.f32 %v2948_v53, %v2137_v2  ;;  %v2434_v16 = vsel %vm442_vm1, %v2429_v5, %v2433_v7  ;;  %v2163_v20 = vsel %vm2160_vm5, %v2162_v12, %v2158_v10  ;;  %v2526_v25 = vadd.f32 %v2525_v8, %v2481_v54 }
 0x51e   : > { %2811 = vst [vmem:[%s3523_s14 + $0x10] sm:$0xff] %v2434_v16  ;;  %v2167_v29 = vrot.slane %v2163_v20, 7 }
 0x51f   : > { %v2139_v26 = vadd.f32 %v2948_v53, %v2138_v14  ;;  %v2573_v17 = vadd.f32 %v2569_v28, %v2526_v25 }
 0x521   : > { %v2143_v18 = vsel %vm2142_vm8, %v2948_v53, %v2139_v26 }
 0x522   : > { %v2148_v39 = vsel %vm2145_vm11, %v2147_v3, %v2143_v18  ;;  %v2549_v44 = vpop.f32.mrf.mxu0 }
 0x523   : > { %v2169_v23 = vsel %vm2168_vm9, %v2148_v39, %v2167_v29  ;;  %v2572_v30 = vadd.f32 %v2549_v44, %v2506_v6  ;;  %v2593_v38 = vpop.f32.mrf.mxu2 }
 0x524   : > { %v2613_v36 = vpop.f32.mrf.mxu3  ;;  %2175 = vst.msk [vmem:[%s392_s25] sm:$0x3] %vm2173_vm10, %v2169_v23 }
 0x525   : > { %v2617_v27 = vadd.f32 %v2613_v36, %v2573_v17  ;;  %v2616_v22 = vadd.f32 %v2593_v38, %v2572_v30 }
 0x527   : > { %v2619_v32 = vadd.f32 %v2617_v27, %v3515_v24  ;;  %v2618_v40 = vadd.f32 %v2616_v22, %v3515_v24 }
 0x529   : > { %v2621_v41 = vmax.f32 %v2619_v32, 0.0  ;;  %v2620_v21 = vmax.f32 %v2618_v40, 0.0 }
 0x52b   : > { %v2624_v19 = vrot.slane %v2621_v41, 4 }
 0x52d   : > { %v2625_v42 = vsel %vm442_vm1, %v2620_v21, %v2624_v19 }
 0x52e   : > { %2820 = vst [vmem:[%s3523_s14 + $0x18] sm:$0xff] %v2625_v42 }
 0x52f PF: > { %s22_s17 = sadd.s32 1, %s2955_s17  }
 0x530   : > { %p19_p4 = scmp.ge.s32.totalorder %s22_s17, 4  }
 0x532   :  { %21 = sbr.rel (!%p19_p4) target bundleno = 1 (0x1), region = 106 }

</bundles_post_ra>
